<compile_context>
chip_gen: v7x
topology: tpu7x:2x2x1
jax: 0.10.0
libtpu: 0.0.40
codegen_flags: <defaults>
</compile_context>

<pallas_src>
import functools
import math

import jax
import jax.numpy as jnp
from jax.experimental import pallas as pl
from jax.experimental.pallas import tpu as pltpu

LANE = 128
BN_EPS = 1e-5


def _activation_fn(name):
    if name == "relu":
        return lambda v: jnp.maximum(v, 0.0)
    if name == "sigmoid":
        return jax.nn.sigmoid
    if name == "tanh":
        return jnp.tanh
    raise ValueError(f"unknown activation: {name}")


def _round_up(n, m=LANE):
    return ((n + m - 1) // m) * m


def _pad2(a, rows, cols):
    return jnp.pad(a, ((0, rows - a.shape[0]), (0, cols - a.shape[1])))


def _vmem_limit_bytes():
    """Generation-aware scoped-VMEM limit (v7x has 64 MiB/core vs 128 MiB)."""
    try:
        phys = int(pltpu.get_tpu_info().vmem_capacity_bytes)
    except Exception:
        phys = 64 * 1024 * 1024          # conservative: v7x per-core VMEM
    return int(min(phys * 3 // 4, 96 * 1024 * 1024))


# -----------------------------------------------------------------------------
# Segment kernel (BN path):
#   [optional in-kernel BN of previous layer: sum/sq/gamma/beta -> scale/shift]
#   -> Linear (bf16 MXU operands, f32 acc) -> [optional activation]
#   -> [optional BN-stat accumulation on the f32 activations]
#   -> bf16 (intermediate) or f32 (final) store.
# -----------------------------------------------------------------------------
def _make_segment_kernel(has_norm_in, act_out, emit_stats, activation,
                         inv_batch, stat_axis):
    act = _activation_fn(activation)

    def kernel(*refs):
        idx = 0
        x_ref = refs[idx]; idx += 1
        if has_norm_in:
            sum_in, sq_in, g_ref, be_ref = refs[idx:idx + 4]; idx += 4
        w_ref = refs[idx]; b_ref = refs[idx + 1]; idx += 2
        out_ref = refs[idx]; idx += 1
        if emit_stats:
            sum_out, sq_out = refs[idx], refs[idx + 1]

        x = x_ref[...]
        if has_norm_in:
            # BatchNorm of the previous layer's (activated) output, folded to
            # y = x*scale + shift, computed in-kernel from raw f32 stats.
            s = sum_in[...]
            sq = sq_in[...]
            mean = s * inv_batch
            var = jnp.maximum(sq * inv_batch - mean * mean, 0.0)  # biased var
            inv = jax.lax.rsqrt(var + BN_EPS)                      # EUP slot
            scale = g_ref[...] * inv
            shift = be_ref[...] - mean * scale
            h = x.astype(jnp.float32) * scale + shift
            lhs = h.astype(jnp.bfloat16)
        else:
            lhs = x.astype(jnp.bfloat16)

        # bf16 operands, f32 accumulation on the MXU.
        y = jnp.dot(lhs, w_ref[...], preferred_element_type=jnp.float32)
        y = y + b_ref[...]
        if act_out:
            y = act(y)

        out_ref[...] = y.astype(out_ref.dtype)

        if emit_stats:
            @pl.when(pl.program_id(stat_axis) == 0)
            def _init():
                sum_out[...] = jnp.zeros_like(sum_out)
                sq_out[...] = jnp.zeros_like(sq_out)
            # Stats on the f32 activations (before the bf16 store).
            sum_out[...] += jnp.sum(y, axis=0, keepdims=True)
            sq_out[...] += jnp.sum(y * y, axis=0, keepdims=True)

    return kernel


def _segment_call(h, stats, gamma, beta, w, b, *, kp, np_, has_norm_in,
                  act_out, emit_stats, activation, batch_tile, inv_batch,
                  out_dtype, vmem_limit):
    batch = h.shape[0]
    grid = (batch // batch_tile,)

    act_map = lambda i: (i, 0)
    res_map = lambda i: (0, 0)
    kernel = _make_segment_kernel(has_norm_in, act_out, emit_stats,
                                  activation, inv_batch, stat_axis=0)

    in_specs = [pl.BlockSpec((batch_tile, kp), act_map)]
    inputs = [h]
    if has_norm_in:
        in_specs += [pl.BlockSpec((1, kp), res_map),   # sum      (resident)
                     pl.BlockSpec((1, kp), res_map),   # sum_sq   (resident)
                     pl.BlockSpec((1, kp), res_map),   # gamma    (resident)
                     pl.BlockSpec((1, kp), res_map)]   # beta     (resident)
        inputs += [stats[0], stats[1], gamma, beta]
    in_specs += [pl.BlockSpec((kp, np_), res_map),     # W        (resident)
                 pl.BlockSpec((1, np_), res_map)]      # bias     (resident)
    inputs += [w, b]

    out_shape = [jax.ShapeDtypeStruct((batch, np_), out_dtype)]
    out_specs = [pl.BlockSpec((batch_tile, np_), act_map)]
    if emit_stats:
        out_shape += [jax.ShapeDtypeStruct((1, np_), jnp.float32)] * 2
        out_specs += [pl.BlockSpec((1, np_), res_map)] * 2

    # Stats segments accumulate into the same output block across batch tiles
    # -> "arbitrary".  Stat-free segments are independent per tile ->
    # "parallel" (megacore can split the batch grid).
    semantics = ("arbitrary",) if emit_stats else ("parallel",)

    outs = pl.pallas_call(
        kernel,
        grid=grid,
        out_shape=tuple(out_shape),
        in_specs=in_specs,
        out_specs=tuple(out_specs),
        compiler_params=pltpu.CompilerParams(
            dimension_semantics=semantics,
            vmem_limit_bytes=vmem_limit),
    )(*inputs)

    if emit_stats:
        return outs[0], (outs[1], outs[2])
    return outs[0], None


# -----------------------------------------------------------------------------
# Fully fused kernel (batchnorm=False): every Linear+activation in one
# pallas_call, all weights/biases resident, activations never leave VMEM.
# -----------------------------------------------------------------------------
def _make_fused_kernel(n_seg, activation):
    act = _activation_fn(activation)

    def kernel(*refs):
        x_ref = refs[0]
        out_ref = refs[-1]
        h = x_ref[...]
        for si in range(n_seg):
            w_ref = refs[1 + 2 * si]
            b_ref = refs[2 + 2 * si]
            lhs = h.astype(jnp.bfloat16)
            y = jnp.dot(lhs, w_ref[...], preferred_element_type=jnp.float32)
            y = y + b_ref[...]
            if si < n_seg - 1:
                h = act(y)            # stays f32 in VMEM/vregs
            else:
                out_ref[...] = y.astype(out_ref.dtype)

    return kernel


def _fused_call(h, weights, biases, plan, activation, batch_tile, vmem_limit):
    batch = h.shape[0]
    n_seg = len(plan)
    kp0 = plan[0][0]
    np_last = plan[-1][1]
    kernel = _make_fused_kernel(n_seg, activation)

    in_specs = [pl.BlockSpec((batch_tile, kp0), lambda i: (i, 0))]
    inputs = [h]
    for si, (kp, np_, *_rest) in enumerate(plan):
        in_specs += [pl.BlockSpec((kp, np_), lambda i: (0, 0)),
                     pl.BlockSpec((1, np_), lambda i: (0, 0))]
        inputs += [weights[si], biases[si]]

    return pl.pallas_call(
        kernel,
        grid=(batch // batch_tile,),
        out_shape=jax.ShapeDtypeStruct((batch, np_last), jnp.float32),
        in_specs=in_specs,
        out_specs=pl.BlockSpec((batch_tile, np_last), lambda i: (i, 0)),
        compiler_params=pltpu.CompilerParams(
            dimension_semantics=("parallel",),
            vmem_limit_bytes=vmem_limit),
    )(*inputs)


def _choose_batch_tile(batch, plan, weight_bytes, vmem_budget):
    """Largest batch tile (multiple of 8 sublanes, dividing the batch, capped
    at batch//2 so the grid keeps >= 2 tiles) whose double-buffered activation
    blocks (bf16 in, f32-worst-case out) + f32 temporaries + resident weights
    fit the budget."""
    candidates = (2048, 1024, 512, 256, 128, 64, 32, 16, 8)
    max_tile = batch // 2 if batch >= 16 else batch
    for tile in candidates:
        if tile > max_tile or batch % tile:
            continue
        worst = 0
        for (kp, np_, *_rest) in plan:
            in_bytes = 2 * tile * kp * 2        # bf16 input block, dbl-buffered
            out_bytes = 2 * tile * np_ * 4      # f32 output block, dbl-buffered
            scratch = tile * max(kp, np_) * 4   # in-kernel f32 temporaries
            worst = max(worst, in_bytes + out_bytes + scratch)
        if worst + weight_bytes + (1 << 20) <= vmem_budget:
            return tile
    return batch   # tiny / odd batch: one block covering the full array


# -----------------------------------------------------------------------------
# Parameter construction (mimics nn.Linear / nn.BatchNorm1d init) + padding.
# -----------------------------------------------------------------------------
def build_mlp(key, in_features, out_features, layer_sizes, activation, batchnorm):
    assert len(layer_sizes) >= 1
    widths = [in_features] + list(layer_sizes) + [out_features]
    n_seg = len(widths) - 1
    keys = jax.random.split(key, n_seg)

    raw_w, raw_b = [], []
    for si in range(n_seg):
        fan_in, fan_out = widths[si], widths[si + 1]
        kw, kb = jax.random.split(keys[si])
        bound = 1.0 / math.sqrt(fan_in)
        raw_w.append(jax.random.uniform(kw, (fan_in, fan_out), jnp.float32,
                                        -bound, bound))
        raw_b.append(jax.random.uniform(kb, (1, fan_out), jnp.float32,
                                        -bound, bound))
    raw_g = [jnp.ones((1, f), jnp.float32) for f in layer_sizes] if batchnorm else []
    raw_be = [jnp.zeros((1, f), jnp.float32) for f in layer_sizes] if batchnorm else []

    plan, pad_w, pad_b = [], [], []
    for si in range(n_seg):
        kp, np_ = _round_up(widths[si]), _round_up(widths[si + 1])
        plan.append((kp, np_,
                     bool(batchnorm and si > 0),           # normalize input
                     si < n_seg - 1,                        # apply activation
                     bool(batchnorm and si < n_seg - 1)))   # emit BN stats
        # Zero-padded rows/cols => padded lanes never leak into real ones.
        pad_w.append(_pad2(raw_w[si], kp, np_).astype(jnp.bfloat16))
        pad_b.append(_pad2(raw_b[si], 1, np_))
    # gamma padded with zeros => padded lanes normalize to exactly 0.
    pad_g = [_pad2(g, 1, _round_up(g.shape[1])) for g in raw_g]
    pad_be = [_pad2(b, 1, _round_up(b.shape[1])) for b in raw_be]

    return (tuple(plan), (pad_w, pad_b, pad_g, pad_be),
            (raw_w, raw_b, raw_g, raw_be))


@functools.partial(jax.jit, static_argnames=("plan", "batch_tile",
                                             "activation", "vmem_limit"))
def _mlp_forward_padded(x_pad, weights, biases, gammas, betas, *,
                        plan, batch_tile, activation, vmem_limit):
    batch = x_pad.shape[0]
    inv_batch = 1.0 / batch
    n_seg = len(plan)
    any_bn = any(p[2] or p[4] for p in plan)

    if not any_bn:
        # No BN boundaries -> fuse the whole MLP into a single pallas_call.
        return _fused_call(x_pad, weights, biases, plan, activation,
                           batch_tile, vmem_limit)

    h = x_pad
    stats = None
    bn_idx = 0
    for si, (kp, np_, has_norm_in, act_out, emit_stats) in enumerate(plan):
        gamma = beta = None
        if has_norm_in:
            gamma, beta = gammas[bn_idx], betas[bn_idx]
            bn_idx += 1
        out_dtype = jnp.float32 if si == n_seg - 1 else jnp.bfloat16
        h, stats = _segment_call(
            h, stats, gamma, beta, weights[si], biases[si],
            kp=kp, np_=np_, has_norm_in=has_norm_in, act_out=act_out,
            emit_stats=emit_stats, activation=activation,
            batch_tile=batch_tile, inv_batch=inv_batch,
            out_dtype=out_dtype, vmem_limit=vmem_limit)
    return h


def mlp_forward(x, plan, padded_params, *, activation, out_features):
    pad_w, pad_b, pad_g, pad_be = padded_params
    batch = x.shape[0]
    # bf16 at-rest for the (padded) input activations.
    x_pad = _pad2(x.astype(jnp.float32), batch, plan[0][0]).astype(jnp.bfloat16)

    weight_bytes = sum(int(w.size) * w.dtype.itemsize for w in pad_w)
    weight_bytes += sum(int(b.size) * 4 for b in pad_b)
    vmem_limit = _vmem_limit_bytes()
    batch_tile = _choose_batch_tile(batch, plan, weight_bytes,
                                    vmem_budget=vmem_limit - (2 << 20))

    out = _mlp_forward_padded(x_pad, pad_w, pad_b, pad_g, pad_be,
                              plan=plan, batch_tile=batch_tile,
                              activation=activation, vmem_limit=vmem_limit)
    return out[:, :out_features]


# -----------------------------------------------------------------------------
# References.
# -----------------------------------------------------------------------------
def mlp_reference_padded(x_pad_bf16, plan, padded_params, activation):
    """Pure-JAX replica of the exact kernel math (padded widths, bf16 matmul
    operands, bf16 intermediate storage on the BN path, BN from raw stats)."""
    pad_w, pad_b, pad_g, pad_be = padded_params
    act = _activation_fn(activation)
    batch = x_pad_bf16.shape[0]
    inv_batch = 1.0 / batch
    n_seg = len(plan)
    any_bn = any(p[2] or p[4] for p in plan)

    h = x_pad_bf16
    stats, bn_idx = None, 0
    for si, (kp, np_, has_norm_in, act_out, emit_stats) in enumerate(plan):
        if has_norm_in:
            s, sq = stats
            mean = s * inv_batch
            var = jnp.maximum(sq * inv_batch - mean * mean, 0.0)
            inv = jax.lax.rsqrt(var + BN_EPS)
            scale = pad_g[bn_idx] * inv
            shift = pad_be[bn_idx] - mean * scale
            bn_idx += 1
            lhs = (h.astype(jnp.float32) * scale + shift).astype(jnp.bfloat16)
        else:
            lhs = h.astype(jnp.bfloat16)
        y = jnp.dot(lhs, pad_w[si], preferred_element_type=jnp.float32) + pad_b[si]
        if act_out:
            y = act(y)
        if emit_stats:
            stats = (jnp.sum(y, axis=0, keepdims=True),
                     jnp.sum(y * y, axis=0, keepdims=True))
        if si < n_seg - 1:
            # BN path stores bf16 between segments; fused path keeps f32.
            h = y.astype(jnp.bfloat16) if any_bn else y
        else:
            h = y
    return h


def mlp_reference_f32(x, raw_params, activation, batchnorm):
    """Unpadded f32 reference with the original PyTorch training-mode semantics."""
    raw_w, raw_b, raw_g, raw_be = raw_params
    act = _activation_fn(activation)
    h = x.astype(jnp.float32)
    n_seg = len(raw_w)
    for si in range(n_seg):
        h = h @ raw_w[si] + raw_b[si]
        if si < n_seg - 1:
            h = act(h)
            if batchnorm:
                mean = jnp.mean(h, axis=0, keepdims=True)
                var = jnp.mean((h - mean) ** 2, axis=0, keepdims=True)
                h = (h - mean) * jax.lax.rsqrt(var + BN_EPS) * raw_g[si] + raw_be[si]
    return h


if __name__ == "__main__":
    # MLP(in_features=32, out_features=8, layer_sizes=[64, 32],
    #     activation='relu', batchnorm=...)
    in_features, out_features = 32, 8
    layer_sizes = [64, 32]
    batch = 256            # 2-tile batch grid with tile=128

    key = jax.random.PRNGKey(0)
    kx, kparam = jax.random.split(key)
    x = jax.random.normal(kx, (batch, in_features), jnp.float32)

    ok = True
    for batchnorm, activation in ((True, "relu"), (False, "tanh")):
        plan, padded_params, raw_params = build_mlp(
            kparam, in_features, out_features, layer_sizes, activation, batchnorm)

        out = mlp_forward(x, plan, padded_params, activation=activation,
                          out_features=out_features)
        out = jax.block_until_ready(out)
        assert out.shape == (batch, out_features)

        # Exact-math reference (same padding / bf16 storage / staged BN stats).
        x_pad = _pad2(x, batch, plan[0][0]).astype(jnp.bfloat16)
        ref_padded = mlp_reference_padded(x_pad, plan, padded_params, activation)
        ok &= bool(jnp.allclose(out, ref_padded[:, :out_features],
                                atol=2e-3, rtol=2e-3))

        # Original-module (f32, unpadded) semantics; loose tol covers bf16.
        ref_f32 = mlp_reference_f32(x, raw_params, activation, batchnorm)
        ok &= bool(jnp.allclose(out, ref_f32, atol=6e-2, rtol=6e-2))

    assert ok, "mismatch vs reference"

    # TODO(synk): nn.BatchNorm1d running_mean/running_var buffer updates are
    # train-time bookkeeping and are not materialized (forward output unaffected).
    print("KERNEL_OK")
</pallas_src>

<mosaic_0001>
module attributes {stable_mosaic.version = 11 : i64} {
  func.func @kernel(%arg0: i32, %arg1: memref<128x128xbf16, #tpu.memory_space<vmem>>, %arg2: memref<1x128xf32, #tpu.memory_space<vmem>>, %arg3: memref<1x128xf32, #tpu.memory_space<vmem>>, %arg4: memref<1x128xf32, #tpu.memory_space<vmem>>, %arg5: memref<1x128xf32, #tpu.memory_space<vmem>>, %arg6: memref<128x128xbf16, #tpu.memory_space<vmem>>, %arg7: memref<1x128xf32, #tpu.memory_space<vmem>>, %arg8: memref<128x128xf32, #tpu.memory_space<vmem>>) attributes {dimension_semantics = [#tpu.dimension_semantics<parallel>], iteration_bounds = array<i64: 2>, scalar_prefetch = 0 : i64, scratch_operands = 0 : i64, tpu.core_type = #tpu.core_type<tc>, window_params = [{transform_indices = @transform_0, window_bounds = array<i64: 128, 128>}, {pipeline_mode = #tpu.pipeline_mode<synchronous>, transform_indices = @transform_1, window_bounds = array<i64: 1, 128>}, {pipeline_mode = #tpu.pipeline_mode<synchronous>, transform_indices = @transform_2, window_bounds = array<i64: 1, 128>}, {pipeline_mode = #tpu.pipeline_mode<synchronous>, transform_indices = @transform_3, window_bounds = array<i64: 1, 128>}, {pipeline_mode = #tpu.pipeline_mode<synchronous>, transform_indices = @transform_4, window_bounds = array<i64: 1, 128>}, {pipeline_mode = #tpu.pipeline_mode<synchronous>, transform_indices = @transform_5, window_bounds = array<i64: 128, 128>}, {pipeline_mode = #tpu.pipeline_mode<synchronous>, transform_indices = @transform_6, window_bounds = array<i64: 1, 128>}, {transform_indices = @transform_7, window_bounds = array<i64: 128, 128>}]} {
    %c0 = arith.constant 0 : index
    %c0_0 = arith.constant 0 : index
    %0 = vector.load %arg1[%c0, %c0_0] : memref<128x128xbf16, #tpu.memory_space<vmem>>, vector<128x128xbf16>
    %c0_1 = arith.constant 0 : index
    %c0_2 = arith.constant 0 : index
    %1 = vector.load %arg2[%c0_1, %c0_2] : memref<1x128xf32, #tpu.memory_space<vmem>>, vector<1x128xf32>
    %c0_3 = arith.constant 0 : index
    %c0_4 = arith.constant 0 : index
    %2 = vector.load %arg3[%c0_3, %c0_4] : memref<1x128xf32, #tpu.memory_space<vmem>>, vector<1x128xf32>
    %cst = arith.constant 3.906250e-03 : f32
    %3 = vector.broadcast %cst : f32 to vector<1x128xf32>
    %4 = arith.mulf %1, %3 : vector<1x128xf32>
    %cst_5 = arith.constant 3.906250e-03 : f32
    %5 = vector.broadcast %cst_5 : f32 to vector<1x128xf32>
    %6 = arith.mulf %2, %5 : vector<1x128xf32>
    %7 = arith.mulf %4, %4 : vector<1x128xf32>
    %8 = arith.subf %6, %7 : vector<1x128xf32>
    %cst_6 = arith.constant 0.000000e+00 : f32
    %9 = vector.broadcast %cst_6 : f32 to vector<1x128xf32>
    %10 = arith.maximumf %8, %9 : vector<1x128xf32>
    %cst_7 = arith.constant 9.99999974E-6 : f32
    %11 = vector.broadcast %cst_7 : f32 to vector<1x128xf32>
    %12 = arith.addf %10, %11 : vector<1x128xf32>
    %13 = math.rsqrt %12 : vector<1x128xf32>
    %c0_8 = arith.constant 0 : index
    %c0_9 = arith.constant 0 : index
    %14 = vector.load %arg4[%c0_8, %c0_9] : memref<1x128xf32, #tpu.memory_space<vmem>>, vector<1x128xf32>
    %15 = arith.mulf %14, %13 : vector<1x128xf32>
    %c0_10 = arith.constant 0 : index
    %c0_11 = arith.constant 0 : index
    %16 = vector.load %arg5[%c0_10, %c0_11] : memref<1x128xf32, #tpu.memory_space<vmem>>, vector<1x128xf32>
    %17 = arith.mulf %4, %15 : vector<1x128xf32>
    %18 = arith.subf %16, %17 : vector<1x128xf32>
    %19 = arith.extf %0 : vector<128x128xbf16> to vector<128x128xf32>
    %20 = vector.broadcast %15 : vector<1x128xf32> to vector<128x128xf32>
    %21 = arith.mulf %19, %20 : vector<128x128xf32>
    %22 = vector.broadcast %18 : vector<1x128xf32> to vector<128x128xf32>
    %23 = arith.addf %21, %22 : vector<128x128xf32>
    %24 = arith.truncf %23 : vector<128x128xf32> to vector<128x128xbf16>
    %c0_12 = arith.constant 0 : index
    %c0_13 = arith.constant 0 : index
    %25 = vector.load %arg6[%c0_12, %c0_13] : memref<128x128xbf16, #tpu.memory_space<vmem>>, vector<128x128xbf16>
    %cst_14 = arith.constant dense<0.000000e+00> : vector<128x128xf32>
    %26 = tpu.matmul %24, %25, %cst_14 {dimension_numbers = #tpu.dot_dimension_numbers<[1], [0], [0], [1], [0, 0, 1, 1], [], []>} : vector<128x128xbf16>, vector<128x128xbf16>, vector<128x128xf32> -> vector<128x128xf32>
    %c0_15 = arith.constant 0 : index
    %c0_16 = arith.constant 0 : index
    %27 = vector.load %arg7[%c0_15, %c0_16] : memref<1x128xf32, #tpu.memory_space<vmem>>, vector<1x128xf32>
    %28 = vector.broadcast %27 : vector<1x128xf32> to vector<128x128xf32>
    %29 = arith.addf %26, %28 : vector<128x128xf32>
    %c0_17 = arith.constant 0 : index
    %c0_18 = arith.constant 0 : index
    %30 = vector.load %arg8[%c0_17, %c0_18] : memref<128x128xf32, #tpu.memory_space<vmem>>, vector<128x128xf32>
    tpu.vector_store %arg8[%c0_17, %c0_18], %29 {strides = array<i32>} : memref<128x128xf32, #tpu.memory_space<vmem>>, vector<128x128xf32>,
    return
  }
  func.func @transform_0(%arg0: i32) -> (i32, i32) {
    %c0_i32 = arith.constant 0 : i32
    %c0_i32_0 = arith.constant 0 : i32
    return %arg0, %c0_i32 : i32, i32
  }
  func.func @transform_1(%arg0: i32) -> (i32, i32) {
    %c0_i32 = arith.constant 0 : i32
    %c0_i32_0 = arith.constant 0 : i32
    %c0_i32_1 = arith.constant 0 : i32
    return %c0_i32, %c0_i32_0 : i32, i32
  }
  func.func @transform_2(%arg0: i32) -> (i32, i32) {
    %c0_i32 = arith.constant 0 : i32
    %c0_i32_0 = arith.constant 0 : i32
    %c0_i32_1 = arith.constant 0 : i32
    return %c0_i32, %c0_i32_0 : i32, i32
  }
  func.func @transform_3(%arg0: i32) -> (i32, i32) {
    %c0_i32 = arith.constant 0 : i32
    %c0_i32_0 = arith.constant 0 : i32
    %c0_i32_1 = arith.constant 0 : i32
    return %c0_i32, %c0_i32_0 : i32, i32
  }
  func.func @transform_4(%arg0: i32) -> (i32, i32) {
    %c0_i32 = arith.constant 0 : i32
    %c0_i32_0 = arith.constant 0 : i32
    %c0_i32_1 = arith.constant 0 : i32
    return %c0_i32, %c0_i32_0 : i32, i32
  }
  func.func @transform_5(%arg0: i32) -> (i32, i32) {
    %c0_i32 = arith.constant 0 : i32
    %c0_i32_0 = arith.constant 0 : i32
    %c0_i32_1 = arith.constant 0 : i32
    return %c0_i32, %c0_i32_0 : i32, i32
  }
  func.func @transform_6(%arg0: i32) -> (i32, i32) {
    %c0_i32 = arith.constant 0 : i32
    %c0_i32_0 = arith.constant 0 : i32
    %c0_i32_1 = arith.constant 0 : i32
    return %c0_i32, %c0_i32_0 : i32, i32
  }
  func.func @transform_7(%arg0: i32) -> (i32, i32) {
    %c0_i32 = arith.constant 0 : i32
    %c0_i32_0 = arith.constant 0 : i32
    return %arg0, %c0_i32 : i32, i32
  }
}

module attributes {stable_mosaic.version = 11 : i64} {
  func.func @kernel(%arg0: i32, %arg1: memref<128x128xbf16, #tpu.memory_space<vmem>>, %arg2: memref<1x128xf32, #tpu.memory_space<vmem>>, %arg3: memref<1x128xf32, #tpu.memory_space<vmem>>, %arg4: memref<1x128xf32, #tpu.memory_space<vmem>>, %arg5: memref<1x128xf32, #tpu.memory_space<vmem>>, %arg6: memref<128x128xbf16, #tpu.memory_space<vmem>>, %arg7: memref<1x128xf32, #tpu.memory_space<vmem>>, %arg8: memref<128x128xbf16, #tpu.memory_space<vmem>>, %arg9: memref<1x128xf32, #tpu.memory_space<vmem>>, %arg10: memref<1x128xf32, #tpu.memory_space<vmem>>) attributes {dimension_semantics = [#tpu.dimension_semantics<arbitrary>], iteration_bounds = array<i64: 2>, scalar_prefetch = 0 : i64, scratch_operands = 0 : i64, tpu.core_type = #tpu.core_type<tc>, window_params = [{transform_indices = @transform_0, window_bounds = array<i64: 128, 128>}, {pipeline_mode = #tpu.pipeline_mode<synchronous>, transform_indices = @transform_1, window_bounds = array<i64: 1, 128>}, {pipeline_mode = #tpu.pipeline_mode<synchronous>, transform_indices = @transform_2, window_bounds = array<i64: 1, 128>}, {pipeline_mode = #tpu.pipeline_mode<synchronous>, transform_indices = @transform_3, window_bounds = array<i64: 1, 128>}, {pipeline_mode = #tpu.pipeline_mode<synchronous>, transform_indices = @transform_4, window_bounds = array<i64: 1, 128>}, {pipeline_mode = #tpu.pipeline_mode<synchronous>, transform_indices = @transform_5, window_bounds = array<i64: 128, 128>}, {pipeline_mode = #tpu.pipeline_mode<synchronous>, transform_indices = @transform_6, window_bounds = array<i64: 1, 128>}, {transform_indices = @transform_7, window_bounds = array<i64: 128, 128>}, {pipeline_mode = #tpu.pipeline_mode<synchronous>, transform_indices = @transform_8, window_bounds = array<i64: 1, 128>}, {pipeline_mode = #tpu.pipeline_mode<synchronous>, transform_indices = @transform_9, window_bounds = array<i64: 1, 128>}]} {
    %c0 = arith.constant 0 : index
    %c0_0 = arith.constant 0 : index
    %0 = vector.load %arg1[%c0, %c0_0] : memref<128x128xbf16, #tpu.memory_space<vmem>>, vector<128x128xbf16>
    %c0_1 = arith.constant 0 : index
    %c0_2 = arith.constant 0 : index
    %1 = vector.load %arg2[%c0_1, %c0_2] : memref<1x128xf32, #tpu.memory_space<vmem>>, vector<1x128xf32>
    %c0_3 = arith.constant 0 : index
    %c0_4 = arith.constant 0 : index
    %2 = vector.load %arg3[%c0_3, %c0_4] : memref<1x128xf32, #tpu.memory_space<vmem>>, vector<1x128xf32>
    %cst = arith.constant 3.906250e-03 : f32
    %3 = vector.broadcast %cst : f32 to vector<1x128xf32>
    %4 = arith.mulf %1, %3 : vector<1x128xf32>
    %cst_5 = arith.constant 3.906250e-03 : f32
    %5 = vector.broadcast %cst_5 : f32 to vector<1x128xf32>
    %6 = arith.mulf %2, %5 : vector<1x128xf32>
    %7 = arith.mulf %4, %4 : vector<1x128xf32>
    %8 = arith.subf %6, %7 : vector<1x128xf32>
    %cst_6 = arith.constant 0.000000e+00 : f32
    %9 = vector.broadcast %cst_6 : f32 to vector<1x128xf32>
    %10 = arith.maximumf %8, %9 : vector<1x128xf32>
    %cst_7 = arith.constant 9.99999974E-6 : f32
    %11 = vector.broadcast %cst_7 : f32 to vector<1x128xf32>
    %12 = arith.addf %10, %11 : vector<1x128xf32>
    %13 = math.rsqrt %12 : vector<1x128xf32>
    %c0_8 = arith.constant 0 : index
    %c0_9 = arith.constant 0 : index
    %14 = vector.load %arg4[%c0_8, %c0_9] : memref<1x128xf32, #tpu.memory_space<vmem>>, vector<1x128xf32>
    %15 = arith.mulf %14, %13 : vector<1x128xf32>
    %c0_10 = arith.constant 0 : index
    %c0_11 = arith.constant 0 : index
    %16 = vector.load %arg5[%c0_10, %c0_11] : memref<1x128xf32, #tpu.memory_space<vmem>>, vector<1x128xf32>
    %17 = arith.mulf %4, %15 : vector<1x128xf32>
    %18 = arith.subf %16, %17 : vector<1x128xf32>
    %19 = arith.extf %0 : vector<128x128xbf16> to vector<128x128xf32>
    %20 = vector.broadcast %15 : vector<1x128xf32> to vector<128x128xf32>
    %21 = arith.mulf %19, %20 : vector<128x128xf32>
    %22 = vector.broadcast %18 : vector<1x128xf32> to vector<128x128xf32>
    %23 = arith.addf %21, %22 : vector<128x128xf32>
    %24 = arith.truncf %23 : vector<128x128xf32> to vector<128x128xbf16>
    %c0_12 = arith.constant 0 : index
    %c0_13 = arith.constant 0 : index
    %25 = vector.load %arg6[%c0_12, %c0_13] : memref<128x128xbf16, #tpu.memory_space<vmem>>, vector<128x128xbf16>
    %cst_14 = arith.constant dense<0.000000e+00> : vector<128x128xf32>
    %26 = tpu.matmul %24, %25, %cst_14 {dimension_numbers = #tpu.dot_dimension_numbers<[1], [0], [0], [1], [0, 0, 1, 1], [], []>} : vector<128x128xbf16>, vector<128x128xbf16>, vector<128x128xf32> -> vector<128x128xf32>
    %c0_15 = arith.constant 0 : index
    %c0_16 = arith.constant 0 : index
    %27 = vector.load %arg7[%c0_15, %c0_16] : memref<1x128xf32, #tpu.memory_space<vmem>>, vector<1x128xf32>
    %28 = vector.broadcast %27 : vector<1x128xf32> to vector<128x128xf32>
    %29 = arith.addf %26, %28 : vector<128x128xf32>
    %cst_17 = arith.constant 0.000000e+00 : f32
    %30 = vector.broadcast %cst_17 : f32 to vector<128x128xf32>
    %31 = arith.maximumf %29, %30 : vector<128x128xf32>
    %32 = arith.truncf %31 : vector<128x128xf32> to vector<128x128xbf16>
    %c0_18 = arith.constant 0 : index
    %c0_19 = arith.constant 0 : index
    %33 = vector.load %arg8[%c0_18, %c0_19] : memref<128x128xbf16, #tpu.memory_space<vmem>>, vector<128x128xbf16>
    tpu.vector_store %arg8[%c0_18, %c0_19], %32 {strides = array<i32>} : memref<128x128xbf16, #tpu.memory_space<vmem>>, vector<128x128xbf16>,
    %c0_i32 = arith.constant 0 : i32
    %34 = arith.cmpi eq, %arg0, %c0_i32 : i32
    %35 = arith.extui %34 : i1 to i32
    %c0_i32_20 = arith.constant 0 : i32
    %36 = arith.cmpi ne, %35, %c0_i32_20 : i32
    scf.if %36 {
      %cst_31 = arith.constant 0.000000e+00 : f32
      %48 = vector.broadcast %cst_31 : f32 to vector<1x128xf32>
      %c0_32 = arith.constant 0 : index
      %c0_33 = arith.constant 0 : index
      %49 = vector.load %arg9[%c0_32, %c0_33] : memref<1x128xf32, #tpu.memory_space<vmem>>, vector<1x128xf32>
      tpu.vector_store %arg9[%c0_32, %c0_33], %48 {strides = array<i32>} : memref<1x128xf32, #tpu.memory_space<vmem>>, vector<1x128xf32>,
      %cst_34 = arith.constant 0.000000e+00 : f32
      %50 = vector.broadcast %cst_34 : f32 to vector<1x128xf32>
      %c0_35 = arith.constant 0 : index
      %c0_36 = arith.constant 0 : index
      %51 = vector.load %arg10[%c0_35, %c0_36] : memref<1x128xf32, #tpu.memory_space<vmem>>, vector<1x128xf32>
      tpu.vector_store %arg10[%c0_35, %c0_36], %50 {strides = array<i32>} : memref<1x128xf32, #tpu.memory_space<vmem>>, vector<1x128xf32>,
    } else {
    }
    %c0_21 = arith.constant 0 : index
    %c0_22 = arith.constant 0 : index
    %37 = vector.load %arg9[%c0_21, %c0_22] : memref<1x128xf32, #tpu.memory_space<vmem>>, vector<1x128xf32>
    %cst_23 = arith.constant dense<0.000000e+00> : vector<128xf32>
    %38 = vector.multi_reduction <add>, %31, %cst_23 [0] : vector<128x128xf32> to vector<128xf32>
    %39 = vector.shape_cast %38 : vector<128xf32> to vector<1x128xf32>
    %40 = arith.addf %37, %39 : vector<1x128xf32>
    %c0_24 = arith.constant 0 : index
    %c0_25 = arith.constant 0 : index
    %41 = vector.load %arg9[%c0_24, %c0_25] : memref<1x128xf32, #tpu.memory_space<vmem>>, vector<1x128xf32>
    tpu.vector_store %arg9[%c0_24, %c0_25], %40 {strides = array<i32>} : memref<1x128xf32, #tpu.memory_space<vmem>>, vector<1x128xf32>,
    %c0_26 = arith.constant 0 : index
    %c0_27 = arith.constant 0 : index
    %42 = vector.load %arg10[%c0_26, %c0_27] : memref<1x128xf32, #tpu.memory_space<vmem>>, vector<1x128xf32>
    %43 = arith.mulf %31, %31 : vector<128x128xf32>
    %cst_28 = arith.constant dense<0.000000e+00> : vector<128xf32>
    %44 = vector.multi_reduction <add>, %43, %cst_28 [0] : vector<128x128xf32> to vector<128xf32>
    %45 = vector.shape_cast %44 : vector<128xf32> to vector<1x128xf32>
    %46 = arith.addf %42, %45 : vector<1x128xf32>
    %c0_29 = arith.constant 0 : index
    %c0_30 = arith.constant 0 : index
    %47 = vector.load %arg10[%c0_29, %c0_30] : memref<1x128xf32, #tpu.memory_space<vmem>>, vector<1x128xf32>
    tpu.vector_store %arg10[%c0_29, %c0_30], %46 {strides = array<i32>} : memref<1x128xf32, #tpu.memory_space<vmem>>, vector<1x128xf32>,
    return
  }
  func.func @transform_0(%arg0: i32) -> (i32, i32) {
    %c0_i32 = arith.constant 0 : i32
    %c0_i32_0 = arith.constant 0 : i32
    return %arg0, %c0_i32 : i32, i32
  }
  func.func @transform_1(%arg0: i32) -> (i32, i32) {
    %c0_i32 = arith.constant 0 : i32
    %c0_i32_0 = arith.constant 0 : i32
    %c0_i32_1 = arith.constant 0 : i32
    return %c0_i32, %c0_i32_0 : i32, i32
  }
  func.func @transform_2(%arg0: i32) -> (i32, i32) {
    %c0_i32 = arith.constant 0 : i32
    %c0_i32_0 = arith.constant 0 : i32
    %c0_i32_1 = arith.constant 0 : i32
    return %c0_i32, %c0_i32_0 : i32, i32
  }
  func.func @transform_3(%arg0: i32) -> (i32, i32) {
    %c0_i32 = arith.constant 0 : i32
    %c0_i32_0 = arith.constant 0 : i32
    %c0_i32_1 = arith.constant 0 : i32
    return %c0_i32, %c0_i32_0 : i32, i32
  }
  func.func @transform_4(%arg0: i32) -> (i32, i32) {
    %c0_i32 = arith.constant 0 : i32
    %c0_i32_0 = arith.constant 0 : i32
    %c0_i32_1 = arith.constant 0 : i32
    return %c0_i32, %c0_i32_0 : i32, i32
  }
  func.func @transform_5(%arg0: i32) -> (i32, i32) {
    %c0_i32 = arith.constant 0 : i32
    %c0_i32_0 = arith.constant 0 : i32
    %c0_i32_1 = arith.constant 0 : i32
    return %c0_i32, %c0_i32_0 : i32, i32
  }
  func.func @transform_6(%arg0: i32) -> (i32, i32) {
    %c0_i32 = arith.constant 0 : i32
    %c0_i32_0 = arith.constant 0 : i32
    %c0_i32_1 = arith.constant 0 : i32
    return %c0_i32, %c0_i32_0 : i32, i32
  }
  func.func @transform_7(%arg0: i32) -> (i32, i32) {
    %c0_i32 = arith.constant 0 : i32
    %c0_i32_0 = arith.constant 0 : i32
    return %arg0, %c0_i32 : i32, i32
  }
  func.func @transform_8(%arg0: i32) -> (i32, i32) {
    %c0_i32 = arith.constant 0 : i32
    %c0_i32_0 = arith.constant 0 : i32
    %c0_i32_1 = arith.constant 0 : i32
    return %c0_i32, %c0_i32_0 : i32, i32
  }
  func.func @transform_9(%arg0: i32) -> (i32, i32) {
    %c0_i32 = arith.constant 0 : i32
    %c0_i32_0 = arith.constant 0 : i32
    %c0_i32_1 = arith.constant 0 : i32
    return %c0_i32, %c0_i32_0 : i32, i32
  }
}

module attributes {stable_mosaic.version = 11 : i64} {
  func.func @kernel(%arg0: i32, %arg1: memref<128x128xbf16, #tpu.memory_space<vmem>>, %arg2: memref<128x128xbf16, #tpu.memory_space<vmem>>, %arg3: memref<1x128xf32, #tpu.memory_space<vmem>>, %arg4: memref<128x128xbf16, #tpu.memory_space<vmem>>, %arg5: memref<1x128xf32, #tpu.memory_space<vmem>>, %arg6: memref<1x128xf32, #tpu.memory_space<vmem>>) attributes {dimension_semantics = [#tpu.dimension_semantics<arbitrary>], iteration_bounds = array<i64: 2>, scalar_prefetch = 0 : i64, scratch_operands = 0 : i64, tpu.core_type = #tpu.core_type<tc>, window_params = [{transform_indices = @transform_0, window_bounds = array<i64: 128, 128>}, {pipeline_mode = #tpu.pipeline_mode<synchronous>, transform_indices = @transform_1, window_bounds = array<i64: 128, 128>}, {pipeline_mode = #tpu.pipeline_mode<synchronous>, transform_indices = @transform_2, window_bounds = array<i64: 1, 128>}, {transform_indices = @transform_3, window_bounds = array<i64: 128, 128>}, {pipeline_mode = #tpu.pipeline_mode<synchronous>, transform_indices = @transform_4, window_bounds = array<i64: 1, 128>}, {pipeline_mode = #tpu.pipeline_mode<synchronous>, transform_indices = @transform_5, window_bounds = array<i64: 1, 128>}]} {
    %c0 = arith.constant 0 : index
    %c0_0 = arith.constant 0 : index
    %0 = vector.load %arg1[%c0, %c0_0] : memref<128x128xbf16, #tpu.memory_space<vmem>>, vector<128x128xbf16>
    %c0_1 = arith.constant 0 : index
    %c0_2 = arith.constant 0 : index
    %1 = vector.load %arg2[%c0_1, %c0_2] : memref<128x128xbf16, #tpu.memory_space<vmem>>, vector<128x128xbf16>
    %cst = arith.constant dense<0.000000e+00> : vector<128x128xf32>
    %2 = tpu.matmul %0, %1, %cst {dimension_numbers = #tpu.dot_dimension_numbers<[1], [0], [0], [1], [0, 0, 1, 1], [], []>} : vector<128x128xbf16>, vector<128x128xbf16>, vector<128x128xf32> -> vector<128x128xf32>
    %c0_3 = arith.constant 0 : index
    %c0_4 = arith.constant 0 : index
    %3 = vector.load %arg3[%c0_3, %c0_4] : memref<1x128xf32, #tpu.memory_space<vmem>>, vector<1x128xf32>
    %4 = vector.broadcast %3 : vector<1x128xf32> to vector<128x128xf32>
    %5 = arith.addf %2, %4 : vector<128x128xf32>
    %cst_5 = arith.constant 0.000000e+00 : f32
    %6 = vector.broadcast %cst_5 : f32 to vector<128x128xf32>
    %7 = arith.maximumf %5, %6 : vector<128x128xf32>
    %8 = arith.truncf %7 : vector<128x128xf32> to vector<128x128xbf16>
    %c0_6 = arith.constant 0 : index
    %c0_7 = arith.constant 0 : index
    %9 = vector.load %arg4[%c0_6, %c0_7] : memref<128x128xbf16, #tpu.memory_space<vmem>>, vector<128x128xbf16>
    tpu.vector_store %arg4[%c0_6, %c0_7], %8 {strides = array<i32>} : memref<128x128xbf16, #tpu.memory_space<vmem>>, vector<128x128xbf16>,
    %c0_i32 = arith.constant 0 : i32
    %10 = arith.cmpi eq, %arg0, %c0_i32 : i32
    %11 = arith.extui %10 : i1 to i32
    %c0_i32_8 = arith.constant 0 : i32
    %12 = arith.cmpi ne, %11, %c0_i32_8 : i32
    scf.if %12 {
      %cst_19 = arith.constant 0.000000e+00 : f32
      %24 = vector.broadcast %cst_19 : f32 to vector<1x128xf32>
      %c0_20 = arith.constant 0 : index
      %c0_21 = arith.constant 0 : index
      %25 = vector.load %arg5[%c0_20, %c0_21] : memref<1x128xf32, #tpu.memory_space<vmem>>, vector<1x128xf32>
      tpu.vector_store %arg5[%c0_20, %c0_21], %24 {strides = array<i32>} : memref<1x128xf32, #tpu.memory_space<vmem>>, vector<1x128xf32>,
      %cst_22 = arith.constant 0.000000e+00 : f32
      %26 = vector.broadcast %cst_22 : f32 to vector<1x128xf32>
      %c0_23 = arith.constant 0 : index
      %c0_24 = arith.constant 0 : index
      %27 = vector.load %arg6[%c0_23, %c0_24] : memref<1x128xf32, #tpu.memory_space<vmem>>, vector<1x128xf32>
      tpu.vector_store %arg6[%c0_23, %c0_24], %26 {strides = array<i32>} : memref<1x128xf32, #tpu.memory_space<vmem>>, vector<1x128xf32>,
    } else {
    }
    %c0_9 = arith.constant 0 : index
    %c0_10 = arith.constant 0 : index
    %13 = vector.load %arg5[%c0_9, %c0_10] : memref<1x128xf32, #tpu.memory_space<vmem>>, vector<1x128xf32>
    %cst_11 = arith.constant dense<0.000000e+00> : vector<128xf32>
    %14 = vector.multi_reduction <add>, %7, %cst_11 [0] : vector<128x128xf32> to vector<128xf32>
    %15 = vector.shape_cast %14 : vector<128xf32> to vector<1x128xf32>
    %16 = arith.addf %13, %15 : vector<1x128xf32>
    %c0_12 = arith.constant 0 : index
    %c0_13 = arith.constant 0 : index
    %17 = vector.load %arg5[%c0_12, %c0_13] : memref<1x128xf32, #tpu.memory_space<vmem>>, vector<1x128xf32>
    tpu.vector_store %arg5[%c0_12, %c0_13], %16 {strides = array<i32>} : memref<1x128xf32, #tpu.memory_space<vmem>>, vector<1x128xf32>,
    %c0_14 = arith.constant 0 : index
    %c0_15 = arith.constant 0 : index
    %18 = vector.load %arg6[%c0_14, %c0_15] : memref<1x128xf32, #tpu.memory_space<vmem>>, vector<1x128xf32>
    %19 = arith.mulf %7, %7 : vector<128x128xf32>
    %cst_16 = arith.constant dense<0.000000e+00> : vector<128xf32>
    %20 = vector.multi_reduction <add>, %19, %cst_16 [0] : vector<128x128xf32> to vector<128xf32>
    %21 = vector.shape_cast %20 : vector<128xf32> to vector<1x128xf32>
    %22 = arith.addf %18, %21 : vector<1x128xf32>
    %c0_17 = arith.constant 0 : index
    %c0_18 = arith.constant 0 : index
    %23 = vector.load %arg6[%c0_17, %c0_18] : memref<1x128xf32, #tpu.memory_space<vmem>>, vector<1x128xf32>
    tpu.vector_store %arg6[%c0_17, %c0_18], %22 {strides = array<i32>} : memref<1x128xf32, #tpu.memory_space<vmem>>, vector<1x128xf32>,
    return
  }
  func.func @transform_0(%arg0: i32) -> (i32, i32) {
    %c0_i32 = arith.constant 0 : i32
    %c0_i32_0 = arith.constant 0 : i32
    return %arg0, %c0_i32 : i32, i32
  }
  func.func @transform_1(%arg0: i32) -> (i32, i32) {
    %c0_i32 = arith.constant 0 : i32
    %c0_i32_0 = arith.constant 0 : i32
    %c0_i32_1 = arith.constant 0 : i32
    return %c0_i32, %c0_i32_0 : i32, i32
  }
  func.func @transform_2(%arg0: i32) -> (i32, i32) {
    %c0_i32 = arith.constant 0 : i32
    %c0_i32_0 = arith.constant 0 : i32
    %c0_i32_1 = arith.constant 0 : i32
    return %c0_i32, %c0_i32_0 : i32, i32
  }
  func.func @transform_3(%arg0: i32) -> (i32, i32) {
    %c0_i32 = arith.constant 0 : i32
    %c0_i32_0 = arith.constant 0 : i32
    return %arg0, %c0_i32 : i32, i32
  }
  func.func @transform_4(%arg0: i32) -> (i32, i32) {
    %c0_i32 = arith.constant 0 : i32
    %c0_i32_0 = arith.constant 0 : i32
    %c0_i32_1 = arith.constant 0 : i32
    return %c0_i32, %c0_i32_0 : i32, i32
  }
  func.func @transform_5(%arg0: i32) -> (i32, i32) {
    %c0_i32 = arith.constant 0 : i32
    %c0_i32_0 = arith.constant 0 : i32
    %c0_i32_1 = arith.constant 0 : i32
    return %c0_i32, %c0_i32_0 : i32, i32
  }
}

</mosaic_0001>

<bundles_post_ra>
// kernel: _mlp_forward_padded.4
= control target key start
LH: loop header
LB: loop body
LE: loop exit
PB: predicated region body
PF: predicated region fallthrough
CT: control target
= control target key end

     0   :  { %s1113_s30 = smov 0   ;;  %s1232_s0 = inlined_call_operand.vmem [shape: bf16[256,128], index: 0, kind: input, shape index: {}]   ;;  %s1233_s1 = inlined_call_operand.vmem [shape: f32[1,128], index: 1, kind: input, shape index: {}]   ;;  %s1234_s2 = inlined_call_operand.vmem [shape: f32[1,128], index: 2, kind: input, shape index: {}]   ;;  %s1235_s3 = inlined_call_operand.vmem [shape: f32[1,128], index: 3, kind: input, shape index: {}]   ;;  %s1236_s4 = inlined_call_operand.vmem [shape: f32[1,128], index: 4, kind: input, shape index: {}]   ;;  %s1237_s5 = inlined_call_operand.vmem [shape: bf16[128,128], index: 5, kind: input, shape index: {}]   ;;  %s1238_s6 = inlined_call_operand.vmem [shape: f32[1,128], index: 6, kind: input, shape index: {}]   ;;  %s1239_s7 = inlined_call_operand.vmem [shape: bf16[256,128], index: 7, kind: output, shape index: {0}]   ;;  %s1240_s8 = inlined_call_operand.vmem [shape: f32[1,128], index: 8, kind: output, shape index: {1}]   ;;  %s1241_s9 = inlined_call_operand.vmem [shape: f32[1,128], index: 9, kind: output, shape index: {2}]  }
   0x1 LB: > { %s832_s10 = sadd.s32 4294967295, %s1060_s30   ;;  %p836_p0 = scmp.ge.s32.totalorder %s1060_s30, 1  ;;  %s1060_s30 = sphi %s1113_s30, %s20_s30  }
   0x2   : > { %p283_p1 = scmp.lt.s32.totalorder %s1060_s30, 3 }
   0x4   : > { %p284_p2 = pnand %p836_p0, %p283_p1 }
   0x5   : > { %v1044_v0 = vld [vmem:[%s1237_s5] sm:$0xff] (!%p284_p2)   ;;  %v1045_v1 = vld [vmem:[%s1237_s5 + $0x8] sm:$0xff] (!%p284_p2)   ;;  %v1046_v2 = vld [vmem:[%s1237_s5 + $0x10] sm:$0xff] (!%p284_p2)   ;;  %s837_s23 = sshll.u32 (!%p284_p2), %s832_s10, 4  ;;  %v379_v15 = vlaneseq (!%p284_p2)  ;;  %p866_p4 = scmp.ne.s32.totalorder (!%p284_p2), %s832_s10, 0 }
   0x6   : > { %287 = sbr.rel (%p284_p2) target bundleno = 319 (0x13f), region = 48  ;;  %987 = vmatprep.subr.bf16.mxu0 (!%p284_p2), %v1044_v0  ;;  %1019 = vmatprep.subr.bf16.mxu1 (!%p284_p2), %v1044_v0  ;;  %v1047_v3 = vld [vmem:[%s1237_s5 + $0x18] sm:$0xff] (!%p284_p2)   ;;  %v348_v4 = vld [vmem:[%s1233_s1] sm:$0x1] (!%p284_p2)  ;;  %p320_p3 = scmp.lt.s32.totalorder (!%p284_p2), %s837_s23, 31  ;;  %v1049_v12 = vld [vmem:[%s1237_s5 + $0x28] sm:$0xff] (!%p284_p2)  }
   0x7   : > { %988 = vmatpush3.bf16.msra.mxu0 (!%p284_p2), %v1044_v0  ;;  %1027 = vmatpush3.bf16.msra.mxu1 (!%p284_p2), %v1044_v0  ;;  %v349_v5 = vld [vmem:[%s1234_s2] sm:$0x1] (!%p284_p2)  ;;  %v350_v6 = vmul.f32 (!%p284_p2), 0.00390625, %v348_v4  ;;  %v1050_v14 = vld [vmem:[%s1237_s5 + $0x30] sm:$0xff] (!%p284_p2)   ;;  %v1051_v16 = vld [vmem:[%s1237_s5 + $0x38] sm:$0xff] (!%p284_p2)   ;;  %v380_v17 = vshrl.u32 (!%p284_p2), %v379_v15, 7 }
   0x8   : > { %989 = vmatprep.subr.bf16.mxu0 (!%p284_p2), %v1045_v1  ;;  %1020 = vmatprep.subr.bf16.mxu1 (!%p284_p2), %v1045_v1  ;;  %v351_v7 = vmul.f32 (!%p284_p2), 0.00390625, %v349_v5  ;;  %v1048_v9 = vld [vmem:[%s1237_s5 + $0x20] sm:$0xff] (!%p284_p2)  }
   0x9   : > { %v352_v8 = vmul.f32 (!%p284_p2), %v350_v6, %v350_v6  ;;  %v357_v20 = vld [vmem:[%s1235_s3] sm:$0x1] (!%p284_p2)  ;;  %v381_v22 = vsub.s32 (!%p284_p2), 0, %v380_v17 }
   0xa   : > { %v359_v36 = vld [vmem:[%s1236_s4] sm:$0x1] (!%p284_p2) }
   0xb   : > { %990 = vmatpush3.bf16.msra.mxu0 (!%p284_p2), %v1045_v1  ;;  %1028 = vmatpush3.bf16.msra.mxu1 (!%p284_p2), %v1045_v1  ;;  %v353_v10 = vsub.f32 (!%p284_p2), %v351_v7, %v352_v8 }
   0xc   : > { %991 = vmatprep.subr.bf16.mxu0 (!%p284_p2), %v1046_v2  ;;  %1021 = vmatprep.subr.bf16.mxu1 (!%p284_p2), %v1046_v2 }
   0xd   : > { %v354_v11 = vmax.f32 %v353_v10, 0.0  ;;  %s1243_s23 = smov (!%p320_p3, %s837_s23), 31 }
   0xe   : > { %s838_s11 = sshll.u32 %s1243_s23, 2 }
   0xf   : > { %992 = vmatpush3.bf16.msra.mxu0 %v1046_v2  ;;  %1029 = vmatpush3.bf16.msra.mxu1 %v1046_v2  ;;  %v355_v13 = vadd.f32 1e-05, %v354_v11  ;;  %s323_s14 = scalar_lea.vmem %s1232_s0, %s838_s11  ;;  %s1181_s26 = scalar_lea.vmem %s1239_s7, %s838_s11 }
  0x10   : > { %993 = vmatprep.subr.bf16.mxu0 %v1047_v3  ;;  %1022 = vmatprep.subr.bf16.mxu1 %v1047_v3  ;;  %v886_v18 = vld [vmem:[%s323_s14] sm:$0xff]   ;;  %v957_v21 = vld [vmem:[%s323_s14 + $0x8] sm:$0xff]   ;;  %v958_v24 = vld [vmem:[%s323_s14 + $0x10] sm:$0xff]  }
  0x11   : > { %1052 = vrsqrt.f32 %v355_v13  ;;  %v960_v19 = vld [vmem:[%s323_s14 + $0x20] sm:$0xff]   ;;  %v961_v23 = vld [vmem:[%s323_s14 + $0x28] sm:$0xff]   ;;  %v887_v26 = vunpack.c.l.bf16 %v886_v18  ;;  %v888_v27 = vunpack.c.h.bf16 %v886_v18  ;;  %v962_v29 = vld [vmem:[%s323_s14 + $0x30] sm:$0xff]   ;;  %v891_v32 = vunpack.c.l.bf16 %v957_v21 }
  0x12   : > { %v903_v28 = vunpack.c.l.bf16 %v960_v19  ;;  %v904_v31 = vunpack.c.h.bf16 %v960_v19  ;;  %v892_v33 = vunpack.c.h.bf16 %v957_v21  ;;  %v959_v34 = vld [vmem:[%s323_s14 + $0x18] sm:$0xff]   ;;  %v907_v37 = vunpack.c.l.bf16 %v961_v23 }
  0x13   : > { %994 = vmatpush3.bf16.msra.mxu0 %v1047_v3  ;;  %1030 = vmatpush3.bf16.msra.mxu1 %v1047_v3  ;;  %v963_v35 = vld [vmem:[%s323_s14 + $0x38] sm:$0xff]   ;;  %v908_v38 = vunpack.c.h.bf16 %v961_v23  ;;  %v895_v39 = vunpack.c.l.bf16 %v958_v24  ;;  %v896_v40 = vunpack.c.h.bf16 %v958_v24  ;;  %v911_v43 = vunpack.c.l.bf16 %v962_v29 }
  0x14   : > { %995 = vmatprep.subr.bf16.mxu0 %v1048_v9  ;;  %1023 = vmatprep.subr.bf16.mxu1 %v1048_v9  ;;  %v912_v44 = vunpack.c.h.bf16 %v962_v29  ;;  %v899_v45 = vunpack.c.l.bf16 %v959_v34  ;;  %v900_v46 = vunpack.c.h.bf16 %v959_v34  ;;  %v915_v47 = vunpack.c.l.bf16 %v963_v35 }
  0x15   : > { %v916_v48 = vunpack.c.h.bf16 %v963_v35 }
  0x17   : > { %996 = vmatpush3.bf16.msra.mxu0 %v1048_v9  ;;  %1031 = vmatpush3.bf16.msra.mxu1 %v1048_v9 }
  0x18   : > { %997 = vmatprep.subr.bf16.mxu0 %v1049_v12  ;;  %1024 = vmatprep.subr.bf16.mxu1 %v1049_v12 }
  0x1b   : > { %998 = vmatpush3.bf16.msra.mxu0 %v1049_v12  ;;  %1032 = vmatpush3.bf16.msra.mxu1 %v1049_v12  ;;  %v1053_v25 = vpop.eup %1052 }
  0x1c   : > { %999 = vmatprep.subr.bf16.mxu0 %v1050_v14  ;;  %1025 = vmatprep.subr.bf16.mxu1 %v1050_v14  ;;  %v358_v30 = vmul.f32 %v1053_v25, %v357_v20 }
  0x1e   : > { %v360_v41 = vmul.f32 %v358_v30, %v350_v6  ;;  %v382_v42 = vrot.slane %v358_v30, %v381_v22 }
  0x1f   : > { %1000 = vmatpush3.bf16.msra.mxu0 %v1050_v14  ;;  %1033 = vmatpush3.bf16.msra.mxu1 %v1050_v14 }
  0x20   : > { %1001 = vmatprep.subr.bf16.mxu0 %v1051_v16  ;;  %1026 = vmatprep.subr.bf16.mxu1 %v1051_v16  ;;  %v361_v49 = vsub.f32 %v359_v36, %v360_v41  ;;  %v384_v50 = vmul.f32 %v887_v26, %v382_v42  ;;  %v385_v51 = vmul.f32 %v888_v27, %v382_v42  ;;  %v841_v27 = vld [vmem:[%s1238_s6] ss:$0 sm:$0xff] }
  0x21   : > { %v392_v52 = vmul.f32 %v903_v28, %v382_v42  ;;  %v393_v53 = vmul.f32 %v904_v31, %v382_v42  ;;  %v386_v54 = vmul.f32 %v891_v32, %v382_v42  ;;  %v387_v55 = vmul.f32 %v892_v33, %v382_v42 }
  0x22   : > { %v394_v56 = vmul.f32 %v907_v37, %v382_v42  ;;  %v404_v57 = vrot.slane %v361_v49, %v381_v22  ;;  %v395_v58 = vmul.f32 %v908_v38, %v382_v42  ;;  %v388_v59 = vmul.f32 %v895_v39, %v382_v42 }
  0x23   : > { %1002 = vmatpush3.bf16.msra.mxu0 %v1051_v16  ;;  %1034 = vmatpush3.bf16.msra.mxu1 %v1051_v16  ;;  %v389_v60 = vmul.f32 %v896_v40, %v382_v42  ;;  %v396_v61 = vmul.f32 %v911_v43, %v382_v42  ;;  %v397_v62 = vmul.f32 %v912_v44, %v382_v42 }
  0x24   : > { %v390_v63 = vmul.f32 %v899_v45, %v382_v42  ;;  %v391_v0 = vmul.f32 %v900_v46, %v382_v42  ;;  %v406_v1 = vadd.f32 %v404_v57, %v384_v50  ;;  %v407_v2 = vadd.f32 %v404_v57, %v385_v51 }
  0x25   : > { %v414_v3 = vadd.f32 %v404_v57, %v392_v52  ;;  %v415_v4 = vadd.f32 %v404_v57, %v393_v53  ;;  %v408_v5 = vadd.f32 %v404_v57, %v386_v54  ;;  %v409_v6 = vadd.f32 %v404_v57, %v387_v55 }
  0x26   : > { %v416_v7 = vadd.f32 %v404_v57, %v394_v56  ;;  %v417_v8 = vadd.f32 %v404_v57, %v395_v58  ;;  %v422_v9 = vpack.c.bf16 %v407_v2, %v406_v1  ;;  %v410_v11 = vadd.f32 %v404_v57, %v388_v59 }
  0x27   : > { %v426_v10 = vpack.c.bf16 %v415_v4, %v414_v3  ;;  %v411_v12 = vadd.f32 %v404_v57, %v389_v60  ;;  %v423_v13 = vpack.c.bf16 %v409_v6, %v408_v5  ;;  %v418_v15 = vadd.f32 %v404_v57, %v396_v61 }
  0x28   : > { %v427_v14 = vpack.c.bf16 %v417_v8, %v416_v7  ;;  %v419_v16 = vadd.f32 %v404_v57, %v397_v62  ;;  %1003 = vmatprep.mubr.bf16.mxu0 %v422_v9  ;;  %v412_v18 = vadd.f32 %v404_v57, %v390_v63  ;;  %v413_v19 = vadd.f32 %v404_v57, %v391_v0 }
  0x29   : > { %1011 = vmatprep.mubr.bf16.mxu1 %v426_v10  ;;  %v424_v17 = vpack.c.bf16 %v411_v12, %v410_v11  ;;  %1004 = vmatmul.mubr.bf16.vlgmr.msra.gmra.mrb[0].mxu0 %v423_v13  ;;  %v398_v21 = vmul.f32 %v915_v47, %v382_v42  ;;  %v399_v22 = vmul.f32 %v916_v48, %v382_v42 }
  0x2a   : > { %1012 = vmatmul.mubr.bf16.vlgmr.msra.gmra.mrb[0].mxu1 %v427_v14  ;;  %v428_v20 = vpack.c.bf16 %v419_v16, %v418_v15  ;;  %v425_v25 = vpack.c.bf16 %v413_v19, %v412_v18 }
  0x2b   : > { %1007 = vmatprep.mubr.bf16.mxu0 %v424_v17  ;;  %v420_v23 = vadd.f32 %v404_v57, %v398_v21  ;;  %v421_v24 = vadd.f32 %v404_v57, %v399_v22 }
  0x2c   : > { %1015 = vmatprep.mubr.bf16.mxu1 %v428_v20  ;;  %v1062_v20 = vmov (!%p866_p4), 0.0  }
  0x2d   : > { %v429_v26 = vpack.c.bf16 %v421_v24, %v420_v23  ;;  %698 = vst [vmem:[%s1240_s8] sm:$0x1] (!%p866_p4), %v1062_v20  ;;  %699 = vst [vmem:[%s1241_s9] sm:$0x1] (!%p866_p4), %v1062_v20 }
  0x31   : > { %1008 = vmatmul.mubr.bf16.gmra.mrb[4].mxu0 %v425_v25 }
  0x32   : > { %1016 = vmatmul.mubr.bf16.gmra.mrb[4].mxu1 %v429_v26 }
  0xfc   : > { %v1005_v28 = vpop.f32.mrb[0].mxu0 }
  0xfd   : > { %v1013_v29 = vpop.f32.mrb[0].mxu1  ;;  %v544_v30 = vadd.f32 %v1005_v28, %v841_v27  ;;  %v535_v32 = vpop.f32.mrb[1].mxu0 }
  0xfe   : > { %v576_v31 = vadd.f32 %v1013_v29, %v841_v27  ;;  %v567_v33 = vpop.f32.mrb[1].mxu1  ;;  %v536_v34 = vadd.f32 %v841_v27, %v535_v32  ;;  %v1006_v36 = vpop.f32.mrb[2].mxu0 }
  0xff   : > { %v568_v35 = vadd.f32 %v841_v27, %v567_v33  ;;  %v1014_v37 = vpop.f32.mrb[2].mxu1  ;;  %v547_v38 = vadd.f32 %v1006_v36, %v841_v27  ;;  %v538_v40 = vpop.f32.mrb[3].mxu0  ;;  %v600_v44 = vmax.f32 %v544_v30, 0.0 }
 0x100   : > { %v579_v39 = vadd.f32 %v1014_v37, %v841_v27  ;;  %v570_v41 = vpop.f32.mrb[3].mxu1  ;;  %v539_v42 = vadd.f32 %v841_v27, %v538_v40  ;;  %v1170_v45 = vmax.f32 %v576_v31, 0.0  ;;  %v598_v48 = vmax.f32 %v536_v34, 0.0 }
 0x101   : > { %v571_v43 = vadd.f32 %v841_v27, %v570_v41  ;;  %v601_v46 = vmax.f32 %v547_v38, 0.0  ;;  %v1174_v49 = vmax.f32 %v568_v35, 0.0 }
 0x102   : > { %v1172_v47 = vmax.f32 %v579_v39, 0.0  ;;  %v599_v50 = vmax.f32 %v539_v42, 0.0 }
 0x103   : > { %v1183_v51 = vmax.f32 %v571_v43, 0.0  ;;  %v925_v52 = vpack.c.bf16 %v601_v46, %v600_v44 }
 0x104   : > { %v945_v53 = vpack.c.bf16 %v1172_v47, %v1170_v45  ;;  %v920_v54 = vpack.c.bf16 %v599_v50, %v598_v48  ;;  %v1009_v56 = vpop.f32.mrb[4].mxu0 }
 0x105   : > { %v940_v55 = vpack.c.bf16 %v1183_v51, %v1174_v49  ;;  %v1017_v57 = vpop.f32.mrb[4].mxu1  ;;  %964 = vst [vmem:[%s1181_s26 + $0x8] sm:$0xff] %v925_v52   ;;  %v560_v58 = vadd.f32 %v1009_v56, %v841_v27  ;;  %v551_v60 = vpop.f32.mrb[5].mxu0 }
 0x106   : > { %968 = vst [vmem:[%s1181_s26 + $0x28] sm:$0xff] %v945_v53   ;;  %v592_v59 = vadd.f32 %v1017_v57, %v841_v27  ;;  %v583_v61 = vpop.f32.mrb[5].mxu1  ;;  %921 = vst [vmem:[%s1181_s26] sm:$0xff] %v920_v54   ;;  %v552_v62 = vadd.f32 %v841_v27, %v551_v60  ;;  %v1010_v0 = vpop.f32.mrb[6].mxu0 }
 0x107   : > { %967 = vst [vmem:[%s1181_s26 + $0x20] sm:$0xff] %v940_v55   ;;  %v584_v63 = vadd.f32 %v841_v27, %v583_v61  ;;  %v1018_v1 = vpop.f32.mrb[6].mxu1  ;;  %v563_v2 = vadd.f32 %v1010_v0, %v841_v27  ;;  %v554_v4 = vpop.f32.mrb[7].mxu0  ;;  %v604_v8 = vmax.f32 %v560_v58, 0.0 }
 0x108   : > { %v595_v3 = vadd.f32 %v1018_v1, %v841_v27  ;;  %v586_v5 = vpop.f32.mrb[7].mxu1  ;;  %v555_v6 = vadd.f32 %v841_v27, %v554_v4  ;;  %v612_v9 = vmax.f32 %v592_v59, 0.0  ;;  %v602_v12 = vmax.f32 %v552_v62, 0.0 }
 0x109   : > { %v587_v7 = vadd.f32 %v841_v27, %v586_v5  ;;  %v605_v10 = vmax.f32 %v563_v2, 0.0  ;;  %v610_v13 = vmax.f32 %v584_v63, 0.0  ;;  %697 = sbr.rel (%p866_p4) target bundleno = 272 (0x110), region = 52 }
 0x10a   : > { %v613_v11 = vmax.f32 %v595_v3, 0.0  ;;  %v603_v14 = vmax.f32 %v555_v6, 0.0 }
 0x10b   : > { %v611_v15 = vmax.f32 %v587_v7, 0.0  ;;  %v935_v16 = vpack.c.bf16 %v605_v10, %v604_v8 }
 0x10c   : > { %v955_v17 = vpack.c.bf16 %v613_v11, %v612_v9  ;;  %v930_v18 = vpack.c.bf16 %v603_v14, %v602_v12 }
 0x10d   : > { %v950_v19 = vpack.c.bf16 %v611_v15, %v610_v13  ;;  %966 = vst [vmem:[%s1181_s26 + $0x18] sm:$0xff] %v935_v16  }
 0x10e   : > { %970 = vst [vmem:[%s1181_s26 + $0x38] sm:$0xff] %v955_v17   ;;  %965 = vst [vmem:[%s1181_s26 + $0x10] sm:$0xff] %v930_v18  }
 0x10f   : > { %969 = vst [vmem:[%s1181_s26 + $0x30] sm:$0xff] %v950_v19  }
 0x110 PF: > { %v701_v21 = vadd.f32 %v599_v50, %v598_v48  ;;  %v725_v22 = vmul.f32 %v598_v48, %v598_v48  ;;  %v726_v23 = vmul.f32 %v599_v50, %v599_v50  ;;  %v727_v25 = vmul.f32 %v600_v44, %v600_v44 }
 0x111   : > { %v728_v27 = vmul.f32 %v601_v46, %v601_v46  ;;  %v729_v30 = vmul.f32 %v602_v12, %v602_v12  ;;  %v730_v33 = vmul.f32 %v603_v14, %v603_v14  ;;  %v731_v36 = vmul.f32 %v604_v8, %v604_v8 }
 0x112   : > { %v702_v24 = vadd.f32 %v701_v21, %v600_v44  ;;  %v741_v28 = vadd.f32 %v726_v23, %v725_v22  ;;  %v732_v39 = vmul.f32 %v605_v10, %v605_v10  ;;  %v733_v42 = vmul.f32 %v1174_v49, %v1174_v49 }
 0x113   : > { %v735_v52 = vmul.f32 %v1170_v45, %v1170_v45  ;;  %v736_v55 = vmul.f32 %v1172_v47, %v1172_v47  ;;  %v737_v57 = vmul.f32 %v610_v13, %v610_v13  ;;  %v738_v60 = vmul.f32 %v611_v15, %v611_v15 }
 0x114   : > { %v703_v26 = vadd.f32 %v702_v24, %v601_v46  ;;  %v742_v31 = vadd.f32 %v741_v28, %v727_v25  ;;  %v734_v46 = vmul.f32 %v1183_v51, %v1183_v51  ;;  %v739_v62 = vmul.f32 %v612_v9, %v612_v9 }
 0x115   : > { %v740_v1 = vmul.f32 %v613_v11, %v613_v11 }
 0x116   : > { %v704_v29 = vadd.f32 %v703_v26, %v602_v12  ;;  %v743_v34 = vadd.f32 %v742_v31, %v728_v27 }
 0x118   : > { %v705_v32 = vadd.f32 %v704_v29, %v603_v14  ;;  %v744_v37 = vadd.f32 %v743_v34, %v729_v30 }
 0x11a   : > { %v706_v35 = vadd.f32 %v705_v32, %v604_v8  ;;  %v745_v40 = vadd.f32 %v744_v37, %v730_v33 }
 0x11c   : > { %v707_v38 = vadd.f32 %v706_v35, %v605_v10  ;;  %v746_v43 = vadd.f32 %v745_v40, %v731_v36 }
 0x11e   : > { %v708_v41 = vadd.f32 %v707_v38, %v1174_v49  ;;  %v747_v48 = vadd.f32 %v746_v43, %v732_v39 }
 0x120   : > { %v709_v44 = vadd.f32 %v708_v41, %v1183_v51  ;;  %v748_v53 = vadd.f32 %v747_v48, %v733_v42 }
 0x122   : > { %v710_v50 = vadd.f32 %v709_v44, %v1170_v45  ;;  %v749_v56 = vadd.f32 %v748_v53, %v734_v46 }
 0x124   : > { %v711_v54 = vadd.f32 %v710_v50, %v1172_v47  ;;  %v750_v58 = vadd.f32 %v749_v56, %v735_v52 }
 0x126   : > { %v712_v49 = vadd.f32 %v711_v54, %v610_v13  ;;  %v751_v61 = vadd.f32 %v750_v58, %v736_v55  ;;  %v700_v13 = vld [vmem:[%s1240_s8] sm:$0x1] }
 0x128   : > { %v713_v59 = vadd.f32 %v712_v49, %v611_v15  ;;  %v752_v63 = vadd.f32 %v751_v61, %v737_v57 }
 0x12a   : > { %v714_v51 = vadd.f32 %v713_v59, %v612_v9  ;;  %v753_v2 = vadd.f32 %v752_v63, %v738_v60 }
 0x12c   : > { %v715_v0 = vadd.f32 %v714_v51, %v613_v11  ;;  %v754_v3 = vadd.f32 %v753_v2, %v739_v62  ;;  %v724_v11 = vld [vmem:[%s1241_s9] sm:$0x1] }
 0x12e   : > { %v716_v45 = vrot.slane %v715_v0, 4  ;;  %v755_v5 = vadd.f32 %v754_v3, %v740_v1 }
 0x130   : > { %v717_v4 = vadd.f32 %v716_v45, %v715_v0  ;;  %v756_v7 = vrot.slane %v755_v5, 4 }
 0x132   : > { %v718_v6 = vrot.slane %v717_v4, 2  ;;  %v757_v8 = vadd.f32 %v756_v7, %v755_v5 }
 0x134   : > { %v719_v47 = vadd.f32 %v718_v6, %v717_v4  ;;  %v758_v12 = vrot.slane %v757_v8, 2 }
 0x136   : > { %v720_v10 = vrot.slane %v719_v47, 1  ;;  %v759_v9 = vadd.f32 %v758_v12, %v757_v8 }
 0x138   : > { %v721_v14 = vadd.f32 %v720_v10, %v719_v47  ;;  %v760_v16 = vrot.slane %v759_v9, 1 }
 0x13a   : > { %v722_v15 = vadd.f32 %v721_v14, %v700_v13  ;;  %v761_v17 = vadd.f32 %v760_v16, %v759_v9 }
 0x13c   : > { %723 = vst [vmem:[%s1240_s8] sm:$0x1] %v722_v15  ;;  %v762_v18 = vadd.f32 %v761_v17, %v724_v11 }
 0x13e   : > { %763 = vst [vmem:[%s1241_s9] sm:$0x1] %v762_v18 }
 0x13f PF: > { %s20_s30 = sadd.s32 1, %s1060_s30  }
 0x140   : > { %p17_p5 = scmp.ge.s32.totalorder %s20_s30, 4  }
 0x142   :  { %19 = sbr.rel (!%p17_p5) target bundleno = 1 (0x1), region = 98 }

// kernel: _mlp_forward_padded.5
= control target key start
LH: loop header
LB: loop body
LE: loop exit
PB: predicated region body
PF: predicated region fallthrough
CT: control target
= control target key end

     0   :  { %12 = vsyncpa [#allocation3], 0  ;;  %s1086_s0 = inlined_call_operand.vmem [shape: bf16[256,128], index: 0, kind: input, shape index: {}]   ;;  %s1087_s1 = inlined_call_operand.vmem [shape: f32[1,128], index: 1, kind: input, shape index: {}]   ;;  %s1088_s2 = inlined_call_operand.vmem [shape: f32[1,128], index: 2, kind: input, shape index: {}]   ;;  %s1089_s3 = inlined_call_operand.vmem [shape: f32[1,128], index: 3, kind: input, shape index: {}]   ;;  %s1090_s4 = inlined_call_operand.vmem [shape: f32[1,128], index: 4, kind: input, shape index: {}]   ;;  %s1091_s5 = inlined_call_operand.vmem [shape: bf16[128,128], index: 5, kind: input, shape index: {}]   ;;  %s1092_s6 = inlined_call_operand.vmem [shape: f32[1,128], index: 6, kind: input, shape index: {}]   ;;  %s1093_s7 = inlined_call_operand.hbm [shape: f32[256,128], index: 7, kind: output, shape index: {}]  }
   0x1   :  { %14 = vsyncpa [#allocation3 + $0x1], 0  ;;  %s922_s24 = smov 0   ;;  %s924_s25 = smov 0  }
   0x2   :  { %s926_s26 = smov 0   ;;  %s928_s27 = smov 0  }
   0x3 LB: > { %s943_s28 = sadd.s32 4294967295, %s877_s27   ;;  %s639_s29 = sadd.s32 4294967294, %s877_s27   ;;  %s877_s27 = sphi %s928_s27, %s1099_s27   ;;  %s873_s26 = sphi %s926_s26, %s1098_s26   ;;  %s869_s25 = sphi %s924_s25, %s1097_s25   ;;  %s865_s24 = sphi %s922_s24, %s1096_s24  }
   0x4   : > { %s947_s30 = sadd.s32 1, %s877_s27   ;;  %s179_s8 = sadd.s32 1, %s873_s26 }
   0x5   : > { %s176_s9 = ssub.s32 %s877_s27, %s947_s30  ;;  %p189_p0 = scmp.ne.s32.totalorder %s873_s26, %s869_s25 }
   0x6   : > { %p177_p1 = scmp.eq.s32.totalorder %s176_s9, 0  ;;  %p190_p2 = scmp.eq.s32.totalorder %s943_s28, 1 }
   0x7   : > { %p195_p3 = scmp.ne.s32.totalorder %s869_s25, %s865_s24  ;;  %p196_p4 = scmp.eq.s32.totalorder %s639_s29, 1 }
   0x8   : > { %s958_s10 = scalar_select %p177_p1, %s873_s26, %s179_s8  }
   0x9   : > { %p960_p5 = por %p190_p2, %p189_p0  ;;  %p964_p6 = por %p196_p4, %p195_p3 }
   0xa   : > { %p642_p7 = scmp.ge.s32.totalorder %s877_s27, 1  ;;  %p241_p8 = scmp.lt.s32.totalorder %s877_s27, 3 }
   0xc   : > { %p242_p9 = pnand %p642_p7, %p241_p8 }
   0xd   : > { %v805_v0 = vld [vmem:[%s1091_s5] sm:$0xff] (!%p242_p9)   ;;  %v806_v1 = vld [vmem:[%s1091_s5 + $0x8] sm:$0xff] (!%p242_p9)   ;;  %v807_v2 = vld [vmem:[%s1091_s5 + $0x10] sm:$0xff] (!%p242_p9)   ;;  %s644_s8 = sshll.u32 (!%p242_p9), %s943_s28, 4  ;;  %v328_v15 = vlaneseq (!%p242_p9)  ;;  %s270_s14 = sand.u32 (!%p242_p9), 1, %s869_s25  }
   0xe   : > { %245 = sbr.rel (%p242_p9) target bundleno = 290 (0x122), region = 48  ;;  %716 = vmatprep.subr.bf16.mxu0 (!%p242_p9), %v805_v0  ;;  %748 = vmatprep.subr.bf16.mxu1 (!%p242_p9), %v805_v0  ;;  %v808_v3 = vld [vmem:[%s1091_s5 + $0x18] sm:$0xff] (!%p242_p9)   ;;  %v297_v4 = vld [vmem:[%s1087_s1] sm:$0x1] (!%p242_p9)  ;;  %p274_p10 = scmp.lt.s32.totalorder (!%p242_p9), %s644_s8, 31  ;;  %v810_v12 = vld [vmem:[%s1091_s5 + $0x28] sm:$0xff] (!%p242_p9)  }
   0xf   : > { %717 = vmatpush3.bf16.msra.mxu0 (!%p242_p9), %v805_v0  ;;  %756 = vmatpush3.bf16.msra.mxu1 (!%p242_p9), %v805_v0  ;;  %v298_v5 = vld [vmem:[%s1088_s2] sm:$0x1] (!%p242_p9)  ;;  %v299_v6 = vmul.f32 (!%p242_p9), 0.00390625, %v297_v4  ;;  %v811_v14 = vld [vmem:[%s1091_s5 + $0x30] sm:$0xff] (!%p242_p9)   ;;  %v812_v16 = vld [vmem:[%s1091_s5 + $0x38] sm:$0xff] (!%p242_p9)   ;;  %v329_v17 = vshrl.u32 (!%p242_p9), %v328_v15, 7 }
  0x10   : > { %718 = vmatprep.subr.bf16.mxu0 (!%p242_p9), %v806_v1  ;;  %749 = vmatprep.subr.bf16.mxu1 (!%p242_p9), %v806_v1  ;;  %v300_v7 = vmul.f32 (!%p242_p9), 0.00390625, %v298_v5  ;;  %v809_v9 = vld [vmem:[%s1091_s5 + $0x20] sm:$0xff] (!%p242_p9)   ;;  %s643_s15 = sshll.u32 (!%p242_p9), %s270_s14, 7  ;;  %s660_s19 = sshll.u32 (!%p242_p9), %s943_s28, 11 }
  0x11   : > { %v301_v8 = vmul.f32 (!%p242_p9), %v299_v6, %v299_v6  ;;  %v306_v20 = vld [vmem:[%s1089_s3] sm:$0x1] (!%p242_p9)  ;;  %v330_v22 = vsub.s32 (!%p242_p9), 0, %v329_v17  ;;  %s1033_s22 = scalar_lea.hbm (!%p242_p9), %s1093_s7, %s660_s19  ;;  %s1045_s23 = scalar_lea.sflag (!%p242_p9), [#allocation3], %s270_s14 }
  0x12   : > { %v308_v36 = vld [vmem:[%s1090_s4] sm:$0x1] (!%p242_p9) }
  0x13   : > { %719 = vmatpush3.bf16.msra.mxu0 (!%p242_p9), %v806_v1  ;;  %757 = vmatpush3.bf16.msra.mxu1 (!%p242_p9), %v806_v1  ;;  %v302_v10 = vsub.f32 (!%p242_p9), %v300_v7, %v301_v8 }
  0x14   : > { %720 = vmatprep.subr.bf16.mxu0 (!%p242_p9), %v807_v2  ;;  %750 = vmatprep.subr.bf16.mxu1 (!%p242_p9), %v807_v2 }
  0x15   : > { %v303_v11 = vmax.f32 %v302_v10, 0.0  ;;  %s1101_s8 = smov (!%p274_p10, %s644_s8), 31 }
  0x16   : > { %s645_s18 = sshll.u32 %s1101_s8, 2  ;;  %s879_s8 = smov [#allocation2]  }
  0x17   : > { %721 = vmatpush3.bf16.msra.mxu0 %v807_v2  ;;  %758 = vmatpush3.bf16.msra.mxu1 %v807_v2  ;;  %v304_v13 = vadd.f32 1e-05, %v303_v11  ;;  %s277_s21 = scalar_lea.vmem %s1086_s0, %s645_s18  ;;  %s1016_s18 = scalar_lea.vmem [#allocation2], %s643_s15 }
  0x18   : > { %722 = vmatprep.subr.bf16.mxu0 %v808_v3  ;;  %751 = vmatprep.subr.bf16.mxu1 %v808_v3  ;;  %v662_v18 = vld [vmem:[%s277_s21] sm:$0xff]   ;;  %v693_v21 = vld [vmem:[%s277_s21 + $0x8] sm:$0xff]   ;;  %v694_v24 = vld [vmem:[%s277_s21 + $0x10] sm:$0xff]   ;;  %s577_s20 = sshll.u32 %s1016_s18, 4  ;;  %s819_s9 = sshll.u32 %s879_s8, 4  ;;  %s1035_s20 = int_to_ptr.vmem [resolvable:$true] %s577_s20  ;;  %s820_s9 = int_to_ptr.vmem [resolvable:$false] %s819_s9 }
  0x19   : > { %813 = vrsqrt.f32 %v304_v13  ;;  %v696_v19 = vld [vmem:[%s277_s21 + $0x20] sm:$0xff]   ;;  %v697_v23 = vld [vmem:[%s277_s21 + $0x28] sm:$0xff]   ;;  %v663_v26 = vunpack.c.l.bf16 %v662_v18  ;;  %v664_v27 = vunpack.c.h.bf16 %v662_v18  ;;  %v698_v29 = vld [vmem:[%s277_s21 + $0x30] sm:$0xff]   ;;  %v667_v32 = vunpack.c.l.bf16 %v693_v21  ;;  %s815_s29 = scalar_lea.vmem %s1035_s20, 2048  ;;  %s821_s13 = scalar_lea.vmem %s820_s9, 4096 }
  0x1a   : > { %v679_v28 = vunpack.c.l.bf16 %v696_v19  ;;  %v680_v31 = vunpack.c.h.bf16 %v696_v19  ;;  %v668_v33 = vunpack.c.h.bf16 %v693_v21  ;;  %v695_v34 = vld [vmem:[%s277_s21 + $0x18] sm:$0xff]   ;;  %v683_v37 = vunpack.c.l.bf16 %v697_v23  ;;  %p816_p11 = scmp.ne.s32.totalorder %s1035_s20, %s815_s29  ;;  %p822_p0 = scmp.lt.s32.totalorder %s1035_s20, %s820_s9 }
  0x1b   : > { %723 = vmatpush3.bf16.msra.mxu0 %v808_v3  ;;  %759 = vmatpush3.bf16.msra.mxu1 %v808_v3  ;;  %v699_v35 = vld [vmem:[%s277_s21 + $0x38] sm:$0xff]   ;;  %v684_v38 = vunpack.c.h.bf16 %v697_v23  ;;  %v671_v39 = vunpack.c.l.bf16 %v694_v24  ;;  %v672_v40 = vunpack.c.h.bf16 %v694_v24  ;;  %v687_v43 = vunpack.c.l.bf16 %v698_v29  ;;  %p823_p1 = scmp.lt.s32.totalorder %s821_s13, %s815_s29 }
  0x1c   : > { %724 = vmatprep.subr.bf16.mxu0 %v809_v9  ;;  %752 = vmatprep.subr.bf16.mxu1 %v809_v9  ;;  %v688_v44 = vunpack.c.h.bf16 %v698_v29  ;;  %v675_v45 = vunpack.c.l.bf16 %v695_v34  ;;  %v676_v46 = vunpack.c.h.bf16 %v695_v34  ;;  %v691_v47 = vunpack.c.l.bf16 %v699_v35  ;;  %p817_p12 = pnand %p816_p11, %p960_p5 }
  0x1d   : > { %v692_v48 = vunpack.c.h.bf16 %v699_v35  ;;  %p824_p2 = por %p823_p1, %p822_p0 }
  0x1e   : > { %p818_p13 = pneg %p817_p12 }
  0x1f   : > { %725 = vmatpush3.bf16.msra.mxu0 %v809_v9  ;;  %760 = vmatpush3.bf16.msra.mxu1 %v809_v9 }
  0x20   : > { %726 = vmatprep.subr.bf16.mxu0 %v810_v12  ;;  %753 = vmatprep.subr.bf16.mxu1 %v810_v12  ;;  %p825_p3 = pnand %p824_p2, %p818_p13 }
  0x23   : > { %727 = vmatpush3.bf16.msra.mxu0 %v810_v12  ;;  %761 = vmatpush3.bf16.msra.mxu1 %v810_v12  ;;  %v814_v25 = vpop.eup %813 }
  0x24   : > { %728 = vmatprep.subr.bf16.mxu0 %v811_v14  ;;  %754 = vmatprep.subr.bf16.mxu1 %v811_v14  ;;  %v307_v30 = vmul.f32 %v814_v25, %v306_v20 }
  0x26   : > { %v309_v41 = vmul.f32 %v307_v30, %v299_v6  ;;  %v331_v42 = vrot.slane %v307_v30, %v330_v22 }
  0x27   : > { %729 = vmatpush3.bf16.msra.mxu0 %v811_v14  ;;  %762 = vmatpush3.bf16.msra.mxu1 %v811_v14 }
  0x28   : > { %730 = vmatprep.subr.bf16.mxu0 %v812_v16  ;;  %755 = vmatprep.subr.bf16.mxu1 %v812_v16  ;;  %v310_v49 = vsub.f32 %v308_v36, %v309_v41  ;;  %v333_v50 = vmul.f32 %v663_v26, %v331_v42  ;;  %v334_v51 = vmul.f32 %v664_v27, %v331_v42  ;;  %v646_v27 = vld [vmem:[%s1092_s6] ss:$0 sm:$0xff] }
  0x29   : > { %v341_v52 = vmul.f32 %v679_v28, %v331_v42  ;;  %v342_v53 = vmul.f32 %v680_v31, %v331_v42  ;;  %v335_v54 = vmul.f32 %v667_v32, %v331_v42  ;;  %v336_v55 = vmul.f32 %v668_v33, %v331_v42 }
  0x2a   : > { %v343_v56 = vmul.f32 %v683_v37, %v331_v42  ;;  %v353_v57 = vrot.slane %v310_v49, %v330_v22  ;;  %v344_v58 = vmul.f32 %v684_v38, %v331_v42  ;;  %v337_v59 = vmul.f32 %v671_v39, %v331_v42 }
  0x2b   : > { %731 = vmatpush3.bf16.msra.mxu0 %v812_v16  ;;  %763 = vmatpush3.bf16.msra.mxu1 %v812_v16  ;;  %v338_v60 = vmul.f32 %v672_v40, %v331_v42  ;;  %v345_v61 = vmul.f32 %v687_v43, %v331_v42  ;;  %v346_v62 = vmul.f32 %v688_v44, %v331_v42 }
  0x2c   : > { %v339_v63 = vmul.f32 %v675_v45, %v331_v42  ;;  %v340_v0 = vmul.f32 %v676_v46, %v331_v42  ;;  %v355_v1 = vadd.f32 %v353_v57, %v333_v50  ;;  %v356_v2 = vadd.f32 %v353_v57, %v334_v51 }
  0x2d   : > { %v363_v3 = vadd.f32 %v353_v57, %v341_v52  ;;  %v364_v4 = vadd.f32 %v353_v57, %v342_v53  ;;  %v357_v5 = vadd.f32 %v353_v57, %v335_v54  ;;  %v358_v6 = vadd.f32 %v353_v57, %v336_v55 }
  0x2e   : > { %v365_v7 = vadd.f32 %v353_v57, %v343_v56  ;;  %v366_v8 = vadd.f32 %v353_v57, %v344_v58  ;;  %v371_v9 = vpack.c.bf16 %v356_v2, %v355_v1  ;;  %v359_v11 = vadd.f32 %v353_v57, %v337_v59 }
  0x2f   : > { %v375_v10 = vpack.c.bf16 %v364_v4, %v363_v3  ;;  %v360_v12 = vadd.f32 %v353_v57, %v338_v60  ;;  %v372_v13 = vpack.c.bf16 %v358_v6, %v357_v5  ;;  %v367_v15 = vadd.f32 %v353_v57, %v345_v61 }
  0x30   : > { %v376_v14 = vpack.c.bf16 %v366_v8, %v365_v7  ;;  %v368_v16 = vadd.f32 %v353_v57, %v346_v62  ;;  %732 = vmatprep.mubr.bf16.mxu0 %v371_v9  ;;  %v361_v18 = vadd.f32 %v353_v57, %v339_v63  ;;  %v362_v19 = vadd.f32 %v353_v57, %v340_v0 }
  0x31   : > { %740 = vmatprep.mubr.bf16.mxu1 %v375_v10  ;;  %v373_v17 = vpack.c.bf16 %v360_v12, %v359_v11  ;;  %733 = vmatmul.mubr.bf16.vlgmr.msra.gmra.mrb[0].mxu0 %v372_v13  ;;  %v347_v21 = vmul.f32 %v691_v47, %v331_v42  ;;  %v348_v22 = vmul.f32 %v692_v48, %v331_v42 }
  0x32   : > { %741 = vmatmul.mubr.bf16.vlgmr.msra.gmra.mrb[0].mxu1 %v376_v14  ;;  %v377_v20 = vpack.c.bf16 %v368_v16, %v367_v15  ;;  %v374_v25 = vpack.c.bf16 %v362_v19, %v361_v18 }
  0x33   : > { %736 = vmatprep.mubr.bf16.mxu0 %v373_v17  ;;  %v369_v23 = vadd.f32 %v353_v57, %v347_v21  ;;  %v370_v24 = vadd.f32 %v353_v57, %v348_v22 }
  0x34   : > { %744 = vmatprep.mubr.bf16.mxu1 %v377_v20 }
  0x35   : > { %v378_v26 = vpack.c.bf16 %v370_v24, %v369_v23 }
  0x39   : > { %737 = vmatmul.mubr.bf16.gmra.mrb[4].mxu0 %v374_v25 }
  0x3a   : > { %745 = vmatmul.mubr.bf16.gmra.mrb[4].mxu1 %v378_v26 }
 0x104   : > { %v734_v28 = vpop.f32.mrb[0].mxu0 }
 0x105   : > { %v742_v29 = vpop.f32.mrb[0].mxu1  ;;  %v493_v30 = vadd.f32 %v734_v28, %v646_v27  ;;  %v484_v32 = vpop.f32.mrb[1].mxu0 }
 0x106   : > { %v525_v31 = vadd.f32 %v742_v29, %v646_v27  ;;  %v516_v33 = vpop.f32.mrb[1].mxu1  ;;  %v485_v34 = vadd.f32 %v646_v27, %v484_v32  ;;  %v735_v36 = vpop.f32.mrb[2].mxu0 }
 0x107   : > { %v517_v35 = vadd.f32 %v646_v27, %v516_v33  ;;  %v743_v37 = vpop.f32.mrb[2].mxu1  ;;  %549 = vst [vmem:[%s1016_s18 + $0x10] sm:$0xff] %v493_v30  ;;  %v496_v38 = vadd.f32 %v735_v36, %v646_v27  ;;  %v487_v40 = vpop.f32.mrb[3].mxu0 }
 0x108   : > { %557 = vst [vmem:[%s1016_s18 + $0x50] sm:$0xff] %v525_v31  ;;  %v528_v39 = vadd.f32 %v743_v37, %v646_v27  ;;  %v519_v41 = vpop.f32.mrb[3].mxu1  ;;  %547 = vst [vmem:[%s1016_s18] sm:$0xff] %v485_v34  ;;  %v488_v42 = vadd.f32 %v646_v27, %v487_v40 }
 0x109   : > { %555 = vst [vmem:[%s1016_s18 + $0x40] sm:$0xff] %v517_v35  ;;  %v520_v43 = vadd.f32 %v646_v27, %v519_v41  ;;  %550 = vst [vmem:[%s1016_s18 + $0x18] sm:$0xff] %v496_v38 }
 0x10a   : > { %558 = vst [vmem:[%s1016_s18 + $0x58] sm:$0xff] %v528_v39  ;;  %548 = vst [vmem:[%s1016_s18 + $0x8] sm:$0xff] %v488_v42 }
 0x10b   : > { %556 = vst [vmem:[%s1016_s18 + $0x48] sm:$0xff] %v520_v43 }
 0x10c   : > { %v738_v44 = vpop.f32.mrb[4].mxu0 }
 0x10d   : > { %v746_v45 = vpop.f32.mrb[4].mxu1  ;;  %v509_v46 = vadd.f32 %v738_v44, %v646_v27  ;;  %v500_v48 = vpop.f32.mrb[5].mxu0 }
 0x10e   : > { %v541_v47 = vadd.f32 %v746_v45, %v646_v27  ;;  %v532_v49 = vpop.f32.mrb[5].mxu1  ;;  %v501_v50 = vadd.f32 %v646_v27, %v500_v48  ;;  %v739_v52 = vpop.f32.mrb[6].mxu0 }
 0x10f   : > { %v533_v51 = vadd.f32 %v646_v27, %v532_v49  ;;  %v747_v53 = vpop.f32.mrb[6].mxu1  ;;  %553 = vst [vmem:[%s1016_s18 + $0x30] sm:$0xff] %v509_v46  ;;  %v512_v54 = vadd.f32 %v739_v52, %v646_v27  ;;  %v503_v56 = vpop.f32.mrb[7].mxu0 }
 0x110   : > { %561 = vst [vmem:[%s1016_s18 + $0x70] sm:$0xff] %v541_v47  ;;  %v544_v55 = vadd.f32 %v747_v53, %v646_v27  ;;  %v535_v57 = vpop.f32.mrb[7].mxu1  ;;  %551 = vst [vmem:[%s1016_s18 + $0x20] sm:$0xff] %v501_v50  ;;  %v504_v58 = vadd.f32 %v646_v27, %v503_v56 }
 0x111   : > { %559 = vst [vmem:[%s1016_s18 + $0x60] sm:$0xff] %v533_v51  ;;  %v536_v59 = vadd.f32 %v646_v27, %v535_v57  ;;  %554 = vst [vmem:[%s1016_s18 + $0x38] sm:$0xff] %v512_v54 }
 0x112   : > { %562 = vst [vmem:[%s1016_s18 + $0x78] sm:$0xff] %v544_v55  ;;  %552 = vst [vmem:[%s1016_s18 + $0x28] sm:$0xff] %v504_v58 }
 0x113   : > { %560 = vst [vmem:[%s1016_s18 + $0x68] sm:$0xff] %v536_v59 }
 0x114   : > { %828 = shalt.err (!%p825_p3)
}
 0x115   : > { %s829_s14 = scalar_lea.hbm %s1033_s22, 2048  ;;  %s833_s17 = scalar_lea.hbm %s1093_s7, 4096 }
 0x116   : > { %p830_p4 = scmp.ne.s32.totalorder %s1033_s22, %s829_s14  ;;  %p834_p9 = scmp.lt.u32.totalorder %s1033_s22, %s1093_s7 }
 0x117   : > { %p835_p10 = scmp.lt.u32.totalorder %s833_s17, %s829_s14  ;;  %p837_p12 = scmp.lt.u32.totalorder %s829_s14, %s1033_s22 }
 0x118   : > { %p831_p7 = pnand %p830_p4, %p960_p5 }
 0x119   : > { %p836_p11 = por %p835_p10, %p834_p9 }
 0x11a   : > { %p832_p8 = pneg %p831_p7 }
 0x11b   : > { %p838_p13 = por %p837_p12, %p836_p11 }
 0x11d   : > { %p839_p0 = pnand %p838_p13, %p832_p8 }
 0x11f   : > { %842 = shalt.err (!%p839_p0)
}
 0x120   : > { %s880_s28 = smov 128   ;;  %s881_s21 = smov 8  }
 0x121   : > { %764 = dma.vmem_to_hbm [thread:$0]  (%p960_p5), %s1035_s20, 2048, %s1033_s22, %s1045_s23, %s880_s28, %s880_s28, %s881_s21  }
 0x122 PF: > { %p770_p1 = scmp.ge.s32.totalorder %s877_s27, 2  ;;  %s592_s29 = sand.u32 1, %s865_s24  }
 0x123   : > { %s593_s8 = scalar_lea.sflag [#allocation3], %s592_s29 }
 0x124   : > { %p767_p2 = pnand %p770_p1, %p964_p6 }
 0x126   : > { %860 = dma.done.wait (!%p767_p2), %s593_s8, 2048  }
 0x127   : > { %862 = vsyncadd (!%p767_p2), %s593_s8, 4294965248  ;;  %p17_p3 = scmp.ge.s32.totalorder %s947_s30, 4   ;;  %s1096_s24 = smov %s869_s25 }
 0x128   : > { %s1097_s25 = smov %s873_s26  ;;  %s1098_s26 = smov %s958_s10 }
 0x129   : > { %s1099_s27 = smov %s947_s30  ;;  %19 = sbr.rel (!%p17_p3) target bundleno = 3 (0x3), region = 83 }
 0x130   :  { %598 = vsyncpa [#allocation3], 1 }
 0x131   :  { %600 = vsyncpa [#allocation3 + $0x1], 1 }

// kernel: _mlp_forward_padded.3
= control target key start
LH: loop header
LB: loop body
LE: loop exit
PB: predicated region body
PF: predicated region fallthrough
CT: control target
= control target key end

     0   :  { %11 = vsyncpa [#allocation3], 0  ;;  %s1339_s0 = inlined_call_operand.hbm [shape: bf16[256,128], index: 0, kind: input, shape index: {}]   ;;  %s1340_s1 = inlined_call_operand.hbm [shape: bf16[128,128], index: 1, kind: input, shape index: {}]   ;;  %s1341_s2 = inlined_call_operand.vmem [shape: f32[1,128], index: 2, kind: input, shape index: {}]   ;;  %s1342_s3 = inlined_call_operand.vmem [shape: bf16[256,128], index: 3, kind: output, shape index: {0}]   ;;  %s1343_s4 = inlined_call_operand.vmem [shape: f32[1,128], index: 4, kind: output, shape index: {1}]   ;;  %s1344_s5 = inlined_call_operand.vmem [shape: f32[1,128], index: 5, kind: output, shape index: {2}]  }
   0x1   :  { %13 = vsyncpa [#allocation3 + $0x1], 0 }
   0x2   :  { %14 = vsyncpa [#allocation5], 0  ;;  %s1124_s18 = smov 0   ;;  %s1126_s19 = smov 0  }
   0x3   :  { %s1128_s20 = smov 0   ;;  %s1130_s21 = smov 0  }
   0x4 LB: > { %s1143_s22 = sadd.s32 4294967295, %s1087_s21   ;;  %p40_p0 = scmp.ne.s32.totalorder %s1079_s19, %s1075_s18  ;;  %s1087_s21 = sphi %s1130_s21, %s1361_s21   ;;  %s1083_s20 = sphi %s1128_s20, %s1360_s20   ;;  %s1079_s19 = sphi %s1126_s19, %s1359_s19   ;;  %s1075_s18 = sphi %s1124_s18, %s1358_s18  }
   0x5   : > { %p1345_p1 = scmp.eq.s32.totalorder %s1143_s22, 0  ;;  %p747_p2 = scmp.ge.s32.totalorder %s1087_s21, 1 }
   0x6   : > { %p161_p3 = scmp.lt.s32.totalorder %s1087_s21, 3  ;;  %s1089_s25 = smov [#allocation4]  }
   0x7   : > { %p1152_p5 = por %p1345_p1, %p40_p0  ;;  %s173_s26 = sshll.u32 %s1089_s25, 4  ;;  %s174_s26 = int_to_ptr.vmem [resolvable:$true] %s173_s26 }
   0x8   : > { %p1156_p6 = pnand %p747_p2, %p161_p3  ;;  %s1169_s28 = sadd.s32 1, %s1087_s21  }
   0x9   : > { %s1348_s23 = scalar_select %p1152_p5, 1, 0 }
   0xa   : > { %s1349_s24 = scalar_select %p1156_p6, 1, 0 }
   0xb   : > { %p928_p7 = pneg %p1156_p6  ;;  %s27_s29 = sadd.s32 1, %s1083_s20 }
   0xc   : > { %s24_s30 = ssub.s32 %s1087_s21, %s1169_s28  ;;  %s991_s8 = scalar_lea.hbm %s1340_s1, 1024 }
   0xd   : > { %p1164_p8 = pnand %p928_p7, %p1345_p1  ;;  %p992_p9 = scmp.ne.s32.totalorder %s1340_s1, %s991_s8 }
   0xe   : > { %p998_p13 = scmp.lt.u32.totalorder %s991_s8, %s1340_s1 }
   0xf   : > { %p993_p10 = pneg %p1164_p8 }
  0x11   : > { %p994_p11 = pnand %p993_p10, %p992_p9 }
  0x13   : > { %p995_p12 = pneg %p994_p11 }
  0x15   : > { %p1000_p0 = pnand %p998_p13, %p995_p12 }
  0x17   : > { %1003 = shalt.err (!%p1000_p0)
}
  0x18   : > { %s1004_s13 = scalar_lea.vmem %s174_s26, 1024  ;;  %p1012_p4 = scmp.lt.s32.totalorder %s174_s26, %s174_s26 }
  0x19   : > { %p1005_p2 = scmp.ne.s32.totalorder %s174_s26, %s1004_s13  ;;  %p1013_p1 = scmp.lt.s32.totalorder %s1004_s13, %s1004_s13 }
  0x1b   : > { %p1007_p3 = pnand %p1005_p2, %p993_p10  ;;  %p1014_p5 = por %p1013_p1, %p1012_p4 }
  0x1d   : > { %p1008_p7 = pneg %p1007_p3 }
  0x1f   : > { %p1015_p6 = pnand %p1014_p5, %p1008_p7 }
  0x21   : > { %1018 = shalt.err (!%p1015_p6)
}
  0x22   : > { %s1090_s14 = smov 64   ;;  %s1091_s15 = smov 4  }
  0x23   : > { %931 = dma.hbm_to_vmem [thread:$0]  (!%p1164_p8), %s1340_s1, 1024, %s174_s26, [#allocation5], %s1090_s14, %s1090_s14, %s1091_s15  }
  0x24   : > { %p25_p1 = scmp.eq.s32.totalorder %s24_s30, 0  ;;  %p34_p4 = scmp.ne.s32.totalorder %s1083_s20, %s1079_s19 }
  0x25   : > { %p35_p5 = scmp.eq.s32.totalorder %s1087_s21, 0  ;;  %p937_p6 = scmp.lt.s32.totalorder %s1087_s21, 2 }
  0x26   : > { %s1198_s18 = scalar_select %p25_p1, %s1083_s20, %s27_s29  }
  0x27   : > { %p36_p9 = por %p35_p5, %p34_p4  ;;  %s190_s25 = sand.u32 1, %s1083_s20  }
  0x28   : > { %s750_s6 = sshll.u32 %s190_s25, 6  ;;  %s794_s7 = sshll.u32 %s1087_s21, 10 }
  0x29   : > { %s1205_s27 = scalar_lea.hbm %s1339_s0, %s794_s7  ;;  %s194_s26 = scalar_lea.vmem [#allocation2], %s750_s6 }
  0x2a   : > { %s201_s30 = sshll.u32 %s194_s26, 4  ;;  %p1209_p8 = pnand %p937_p6, %p36_p9  ;;  %s1207_s30 = int_to_ptr.vmem [resolvable:$true] %s201_s30 }
  0x2b   : > { %s1213_s21 = scalar_lea.sflag [#allocation3], %s190_s25  ;;  %s1019_s10 = scalar_lea.hbm %s1205_s27, 1024 }
  0x2c   : > { %p1020_p10 = scmp.ne.s32.totalorder %s1205_s27, %s1019_s10  ;;  %p1021_p11 = pneg %p1209_p8 }
  0x2d   : > { %s1024_s13 = scalar_lea.hbm %s1339_s0, 2048  ;;  %p1025_p0 = scmp.lt.u32.totalorder %s1205_s27, %s1339_s0 }
  0x2e   : > { %p1022_p12 = pnand %p1021_p11, %p1020_p10  ;;  %p1026_p2 = scmp.lt.u32.totalorder %s1024_s13, %s1019_s10 }
  0x2f   : > { %p1028_p7 = scmp.lt.u32.totalorder %s1019_s10, %s1205_s27 }
  0x30   : > { %p1023_p13 = pneg %p1022_p12  ;;  %p1027_p3 = por %p1026_p2, %p1025_p0 }
  0x32   : > { %p1029_p1 = por %p1028_p7, %p1027_p3 }
  0x34   : > { %p1030_p4 = pnand %p1029_p1, %p1023_p13 }
  0x36   : > { %1033 = shalt.err (!%p1030_p4)
}
  0x37   : > { %s1034_s25 = scalar_lea.vmem %s1207_s30, 1024  ;;  %s1092_s6 = smov [#allocation2]  }
  0x38   : > { %p1035_p5 = scmp.ne.s32.totalorder %s1207_s30, %s1034_s25  ;;  %s1039_s7 = sshll.u32 %s1092_s6, 4  ;;  %s1040_s7 = int_to_ptr.vmem [resolvable:$false] %s1039_s7 }
  0x39   : > { %s1041_s8 = scalar_lea.vmem %s1040_s7, 2048  ;;  %p1042_p10 = scmp.lt.s32.totalorder %s1207_s30, %s1040_s7 }
  0x3a   : > { %p1037_p6 = pnand %p1035_p5, %p1021_p11  ;;  %p1043_p12 = scmp.lt.s32.totalorder %s1041_s8, %s1034_s25 }
  0x3c   : > { %p1038_p9 = pneg %p1037_p6  ;;  %p1044_p0 = por %p1043_p12, %p1042_p10 }
  0x3e   : > { %p1045_p2 = pnand %p1044_p0, %p1038_p9 }
  0x40   : > { %1048 = shalt.err (!%p1045_p2)
}
  0x41   : > { %935 = dma.hbm_to_vmem [thread:$0]  (!%p1209_p8), %s1205_s27, 1024, %s1207_s30, %s1213_s21, %s1090_s14, %s1090_s14, %s1091_s15  }
  0x42   : > { %p1352_p11 = scmp.ne.s32.totalorder %s1349_s24, 0 }
  0x43   : > { %s215_s9 = sand.u32 (!%p1352_p11), 1, %s1079_s19   ;;  %p1353_p13 = scmp.ne.s32.totalorder (!%p1352_p11), %s1348_s23, 0 }
  0x44   : > { %213 = sbr.rel (%p1352_p11) target bundleno = 389 (0x185), region = 32  ;;  %s754_s26 = sshll.u32 (!%p1352_p11), %s215_s9, 6 }
  0x45   : > { %s216_s10 = scalar_lea.sflag (!%p1352_p11), [#allocation3], %s215_s9  ;;  %s1247_s11 = scalar_lea.vmem (!%p1352_p11), [#allocation2], %s754_s26 }
  0x4b   : > { %1066 = dma.done.wait (%p1353_p13), %s216_s10, 1024  }
  0x4c   : > { %1068 = vsyncadd (%p1353_p13), %s216_s10, 4294966272  ;;  %p1354_p3 = scmp.eq.s32.totalorder %s1143_s22, 0 }
  0x4e   : > { %1070 = dma.done.wait (%p1354_p3), [#allocation5], 1024   ;;  %p1355_p8 = pmov %p1354_p3 }
  0x4f   : > { %v975_v0 = vld [vmem:[#allocation4] sm:$0xff]   ;;  %v976_v1 = vld [vmem:[#allocation4 + $0x8] sm:$0xff]   ;;  %v977_v2 = vld [vmem:[#allocation4 + $0x10] sm:$0xff]   ;;  %s756_s23 = sshll.u32 %s1143_s22, 4  ;;  %p1356_p1 = scmp.ne.s32.totalorder %s1143_s22, 0 }
  0x50   : > { %1072 = vsyncadd (%p1355_p8), [#allocation5], 4294966272  ;;  %874 = vmatprep.subr.bf16.mxu0 %v975_v0  ;;  %906 = vmatprep.subr.bf16.mxu1 %v975_v0  ;;  %v978_v3 = vld [vmem:[#allocation4 + $0x18] sm:$0xff]   ;;  %v983_v4 = vld [vmem:[%s1247_s11] sm:$0xff]   ;;  %p252_p7 = scmp.lt.s32.totalorder %s756_s23, 31 }
  0x51   : > { %875 = vmatpush3.bf16.msra.mxu0 %v975_v0  ;;  %914 = vmatpush3.bf16.msra.mxu1 %v975_v0  ;;  %v984_v5 = vld [vmem:[%s1247_s11 + $0x20] sm:$0xff]   ;;  %v980_v7 = vld [vmem:[#allocation4 + $0x28] sm:$0xff]   ;;  %v981_v8 = vld [vmem:[#allocation4 + $0x30] sm:$0xff]  }
  0x52   : > { %876 = vmatprep.subr.bf16.mxu0 %v976_v1  ;;  %907 = vmatprep.subr.bf16.mxu1 %v976_v1  ;;  %v979_v6 = vld [vmem:[#allocation4 + $0x20] sm:$0xff]   ;;  %v982_v9 = vld [vmem:[#allocation4 + $0x38] sm:$0xff]   ;;  %v985_v10 = vld [vmem:[%s1247_s11 + $0x8] sm:$0xff]   ;;  %s1363_s23 = smov (!%p252_p7, %s756_s23), 31 }
  0x53   : > { %890 = vmatprep.mubr.bf16.mxu0 %v983_v4  ;;  %898 = vmatprep.mubr.bf16.mxu1 %v984_v5  ;;  %v986_v11 = vld [vmem:[%s1247_s11 + $0x28] sm:$0xff]   ;;  %v987_v12 = vld [vmem:[%s1247_s11 + $0x10] sm:$0xff]   ;;  %v989_v14 = vld [vmem:[%s1247_s11 + $0x18] sm:$0xff]   ;;  %s757_s15 = sshll.u32 %s1363_s23, 2 }
  0x54   : > { %v988_v13 = vld [vmem:[%s1247_s11 + $0x30] sm:$0xff]   ;;  %v990_v15 = vld [vmem:[%s1247_s11 + $0x38] sm:$0xff]   ;;  %v758_v16 = vld [vmem:[%s1341_s2] ss:$0 sm:$0xff]  ;;  %s1278_s29 = scalar_lea.vmem %s1342_s3, %s757_s15 }
  0x55   : > { %877 = vmatpush3.bf16.msra.mxu0 %v976_v1  ;;  %915 = vmatpush3.bf16.msra.mxu1 %v976_v1 }
  0x56   : > { %878 = vmatprep.subr.bf16.mxu0 %v977_v2  ;;  %908 = vmatprep.subr.bf16.mxu1 %v977_v2 }
  0x59   : > { %879 = vmatpush3.bf16.msra.mxu0 %v977_v2  ;;  %916 = vmatpush3.bf16.msra.mxu1 %v977_v2 }
  0x5a   : > { %880 = vmatprep.subr.bf16.mxu0 %v978_v3  ;;  %909 = vmatprep.subr.bf16.mxu1 %v978_v3 }
  0x5d   : > { %881 = vmatpush3.bf16.msra.mxu0 %v978_v3  ;;  %917 = vmatpush3.bf16.msra.mxu1 %v978_v3 }
  0x5e   : > { %882 = vmatprep.subr.bf16.mxu0 %v979_v6  ;;  %910 = vmatprep.subr.bf16.mxu1 %v979_v6 }
  0x61   : > { %883 = vmatpush3.bf16.msra.mxu0 %v979_v6  ;;  %918 = vmatpush3.bf16.msra.mxu1 %v979_v6 }
  0x62   : > { %884 = vmatprep.subr.bf16.mxu0 %v980_v7  ;;  %911 = vmatprep.subr.bf16.mxu1 %v980_v7 }
  0x65   : > { %885 = vmatpush3.bf16.msra.mxu0 %v980_v7  ;;  %919 = vmatpush3.bf16.msra.mxu1 %v980_v7 }
  0x66   : > { %886 = vmatprep.subr.bf16.mxu0 %v981_v8  ;;  %912 = vmatprep.subr.bf16.mxu1 %v981_v8 }
  0x69   : > { %887 = vmatpush3.bf16.msra.mxu0 %v981_v8  ;;  %920 = vmatpush3.bf16.msra.mxu1 %v981_v8 }
  0x6a   : > { %888 = vmatprep.subr.bf16.mxu0 %v982_v9  ;;  %913 = vmatprep.subr.bf16.mxu1 %v982_v9 }
  0x6d   : > { %889 = vmatpush3.bf16.msra.mxu0 %v982_v9  ;;  %921 = vmatpush3.bf16.msra.mxu1 %v982_v9  ;;  %v1093_v9 = vmov (!%p1356_p1), 0.0  }
  0x6e   : > { %590 = vst [vmem:[%s1343_s4] sm:$0x1] (!%p1356_p1), %v1093_v9  ;;  %591 = vst [vmem:[%s1344_s5] sm:$0x1] (!%p1356_p1), %v1093_v9 }
  0x70   : > { %891 = vmatmul.mubr.bf16.vlgmr.msra.gmra.mrb[0].mxu0 %v985_v10  ;;  %899 = vmatmul.mubr.bf16.vlgmr.msra.gmra.mrb[0].mxu1 %v986_v11 }
  0x71   : > { %894 = vmatprep.mubr.bf16.mxu0 %v987_v12  ;;  %902 = vmatprep.mubr.bf16.mxu1 %v988_v13 }
  0x78   : > { %895 = vmatmul.mubr.bf16.gmra.mrb[4].mxu0 %v989_v14  ;;  %903 = vmatmul.mubr.bf16.gmra.mrb[4].mxu1 %v990_v15 }
 0x143   : > { %v892_v17 = vpop.f32.mrb[0].mxu0  ;;  %v900_v18 = vpop.f32.mrb[0].mxu1 }
 0x144   : > { %v436_v19 = vadd.f32 %v892_v17, %v758_v16  ;;  %v468_v20 = vadd.f32 %v900_v18, %v758_v16  ;;  %v427_v21 = vpop.f32.mrb[1].mxu0  ;;  %v459_v22 = vpop.f32.mrb[1].mxu1 }
 0x145   : > { %v428_v23 = vadd.f32 %v758_v16, %v427_v21  ;;  %v460_v24 = vadd.f32 %v758_v16, %v459_v22  ;;  %v893_v25 = vpop.f32.mrb[2].mxu0  ;;  %v901_v26 = vpop.f32.mrb[2].mxu1 }
 0x146   : > { %v439_v27 = vadd.f32 %v893_v25, %v758_v16  ;;  %v471_v28 = vadd.f32 %v901_v26, %v758_v16  ;;  %v430_v29 = vpop.f32.mrb[3].mxu0  ;;  %v462_v30 = vpop.f32.mrb[3].mxu1  ;;  %v492_v33 = vmax.f32 %v436_v19, 0.0  ;;  %v1269_v34 = vmax.f32 %v468_v20, 0.0 }
 0x147   : > { %v431_v31 = vadd.f32 %v758_v16, %v430_v29  ;;  %v463_v32 = vadd.f32 %v758_v16, %v462_v30  ;;  %v490_v37 = vmax.f32 %v428_v23, 0.0  ;;  %v1273_v38 = vmax.f32 %v460_v24, 0.0 }
 0x148   : > { %v493_v35 = vmax.f32 %v439_v27, 0.0  ;;  %v1271_v36 = vmax.f32 %v471_v28, 0.0 }
 0x149   : > { %v491_v39 = vmax.f32 %v431_v31, 0.0  ;;  %v1280_v40 = vmax.f32 %v463_v32, 0.0 }
 0x14a   : > { %v819_v41 = vpack.c.bf16 %v493_v35, %v492_v33  ;;  %v839_v42 = vpack.c.bf16 %v1271_v36, %v1269_v34 }
 0x14b   : > { %v814_v43 = vpack.c.bf16 %v491_v39, %v490_v37  ;;  %v834_v44 = vpack.c.bf16 %v1280_v40, %v1273_v38  ;;  %v896_v45 = vpop.f32.mrb[4].mxu0  ;;  %v904_v46 = vpop.f32.mrb[4].mxu1 }
 0x14c   : > { %851 = vst [vmem:[%s1278_s29 + $0x8] sm:$0xff] %v819_v41   ;;  %855 = vst [vmem:[%s1278_s29 + $0x28] sm:$0xff] %v839_v42   ;;  %v452_v47 = vadd.f32 %v896_v45, %v758_v16  ;;  %v484_v48 = vadd.f32 %v904_v46, %v758_v16  ;;  %v443_v49 = vpop.f32.mrb[5].mxu0  ;;  %v475_v50 = vpop.f32.mrb[5].mxu1 }
 0x14d   : > { %815 = vst [vmem:[%s1278_s29] sm:$0xff] %v814_v43   ;;  %854 = vst [vmem:[%s1278_s29 + $0x20] sm:$0xff] %v834_v44   ;;  %v444_v51 = vadd.f32 %v758_v16, %v443_v49  ;;  %v476_v52 = vadd.f32 %v758_v16, %v475_v50  ;;  %v897_v53 = vpop.f32.mrb[6].mxu0  ;;  %v905_v54 = vpop.f32.mrb[6].mxu1 }
 0x14e   : > { %v455_v55 = vadd.f32 %v897_v53, %v758_v16  ;;  %v487_v56 = vadd.f32 %v905_v54, %v758_v16  ;;  %v446_v57 = vpop.f32.mrb[7].mxu0  ;;  %v478_v58 = vpop.f32.mrb[7].mxu1  ;;  %v496_v61 = vmax.f32 %v452_v47, 0.0  ;;  %v504_v62 = vmax.f32 %v484_v48, 0.0 }
 0x14f   : > { %v447_v59 = vadd.f32 %v758_v16, %v446_v57  ;;  %v479_v60 = vadd.f32 %v758_v16, %v478_v58  ;;  %v494_v1 = vmax.f32 %v444_v51, 0.0  ;;  %v502_v2 = vmax.f32 %v476_v52, 0.0  ;;  %589 = sbr.rel (%p1356_p1) target bundleno = 342 (0x156), region = 44 }
 0x150   : > { %v497_v63 = vmax.f32 %v455_v55, 0.0  ;;  %v505_v0 = vmax.f32 %v487_v56, 0.0 }
 0x151   : > { %v495_v3 = vmax.f32 %v447_v59, 0.0  ;;  %v503_v4 = vmax.f32 %v479_v60, 0.0 }
 0x152   : > { %v829_v5 = vpack.c.bf16 %v497_v63, %v496_v61  ;;  %v849_v6 = vpack.c.bf16 %v505_v0, %v504_v62 }
 0x153   : > { %v824_v7 = vpack.c.bf16 %v495_v3, %v494_v1  ;;  %v844_v8 = vpack.c.bf16 %v503_v4, %v502_v2 }
 0x154   : > { %853 = vst [vmem:[%s1278_s29 + $0x18] sm:$0xff] %v829_v5   ;;  %857 = vst [vmem:[%s1278_s29 + $0x38] sm:$0xff] %v849_v6  }
 0x155   : > { %852 = vst [vmem:[%s1278_s29 + $0x10] sm:$0xff] %v824_v7   ;;  %856 = vst [vmem:[%s1278_s29 + $0x30] sm:$0xff] %v844_v8  }
 0x156 PF: > { %v593_v10 = vadd.f32 %v491_v39, %v490_v37  ;;  %v617_v11 = vmul.f32 %v490_v37, %v490_v37  ;;  %v618_v12 = vmul.f32 %v491_v39, %v491_v39  ;;  %v619_v14 = vmul.f32 %v492_v33, %v492_v33 }
 0x157   : > { %v620_v16 = vmul.f32 %v493_v35, %v493_v35  ;;  %v621_v19 = vmul.f32 %v494_v1, %v494_v1  ;;  %v622_v22 = vmul.f32 %v495_v3, %v495_v3  ;;  %v623_v25 = vmul.f32 %v496_v61, %v496_v61 }
 0x158   : > { %v594_v13 = vadd.f32 %v593_v10, %v492_v33  ;;  %v633_v17 = vadd.f32 %v618_v12, %v617_v11  ;;  %v624_v28 = vmul.f32 %v497_v63, %v497_v63  ;;  %v625_v31 = vmul.f32 %v1273_v38, %v1273_v38 }
 0x159   : > { %v627_v41 = vmul.f32 %v1269_v34, %v1269_v34  ;;  %v628_v44 = vmul.f32 %v1271_v36, %v1271_v36  ;;  %v629_v46 = vmul.f32 %v502_v2, %v502_v2  ;;  %v630_v49 = vmul.f32 %v503_v4, %v503_v4 }
 0x15a   : > { %v595_v15 = vadd.f32 %v594_v13, %v493_v35  ;;  %v634_v20 = vadd.f32 %v633_v17, %v619_v14  ;;  %v626_v35 = vmul.f32 %v1280_v40, %v1280_v40  ;;  %v631_v51 = vmul.f32 %v504_v62, %v504_v62 }
 0x15b   : > { %v632_v54 = vmul.f32 %v505_v0, %v505_v0 }
 0x15c   : > { %v596_v18 = vadd.f32 %v595_v15, %v494_v1  ;;  %v635_v23 = vadd.f32 %v634_v20, %v620_v16 }
 0x15e   : > { %v597_v21 = vadd.f32 %v596_v18, %v495_v3  ;;  %v636_v26 = vadd.f32 %v635_v23, %v621_v19 }
 0x160   : > { %v598_v24 = vadd.f32 %v597_v21, %v496_v61  ;;  %v637_v29 = vadd.f32 %v636_v26, %v622_v22 }
 0x162   : > { %v599_v27 = vadd.f32 %v598_v24, %v497_v63  ;;  %v638_v32 = vadd.f32 %v637_v29, %v623_v25 }
 0x164   : > { %v600_v30 = vadd.f32 %v599_v27, %v1273_v38  ;;  %v639_v37 = vadd.f32 %v638_v32, %v624_v28 }
 0x166   : > { %v601_v33 = vadd.f32 %v600_v30, %v1280_v40  ;;  %v640_v42 = vadd.f32 %v639_v37, %v625_v31 }
 0x168   : > { %v602_v39 = vadd.f32 %v601_v33, %v1269_v34  ;;  %v641_v45 = vadd.f32 %v640_v42, %v626_v35 }
 0x16a   : > { %v603_v43 = vadd.f32 %v602_v39, %v1271_v36  ;;  %v642_v47 = vadd.f32 %v641_v45, %v627_v41 }
 0x16c   : > { %v604_v38 = vadd.f32 %v603_v43, %v502_v2  ;;  %v643_v50 = vadd.f32 %v642_v47, %v628_v44  ;;  %v592_v2 = vld [vmem:[%s1343_s4] sm:$0x1] }
 0x16e   : > { %v605_v48 = vadd.f32 %v604_v38, %v503_v4  ;;  %v644_v52 = vadd.f32 %v643_v50, %v629_v46 }
 0x170   : > { %v606_v40 = vadd.f32 %v605_v48, %v504_v62  ;;  %v645_v55 = vadd.f32 %v644_v52, %v630_v49 }
 0x172   : > { %v607_v53 = vadd.f32 %v606_v40, %v505_v0  ;;  %v646_v56 = vadd.f32 %v645_v55, %v631_v51  ;;  %v616_v0 = vld [vmem:[%s1344_s5] sm:$0x1] }
 0x174   : > { %v608_v34 = vrot.slane %v607_v53, 4  ;;  %v647_v58 = vadd.f32 %v646_v56, %v632_v54 }
 0x176   : > { %v609_v57 = vadd.f32 %v608_v34, %v607_v53  ;;  %v648_v60 = vrot.slane %v647_v58, 4 }
 0x178   : > { %v610_v59 = vrot.slane %v609_v57, 2  ;;  %v649_v61 = vadd.f32 %v648_v60, %v647_v58 }
 0x17a   : > { %v611_v36 = vadd.f32 %v610_v59, %v609_v57  ;;  %v650_v1 = vrot.slane %v649_v61, 2 }
 0x17c   : > { %v612_v63 = vrot.slane %v611_v36, 1  ;;  %v651_v62 = vadd.f32 %v650_v1, %v649_v61 }
 0x17e   : > { %v613_v3 = vadd.f32 %v612_v63, %v611_v36  ;;  %v652_v5 = vrot.slane %v651_v62, 1 }
 0x180   : > { %v614_v4 = vadd.f32 %v613_v3, %v592_v2  ;;  %v653_v6 = vadd.f32 %v652_v5, %v651_v62 }
 0x182   : > { %615 = vst [vmem:[%s1343_s4] sm:$0x1] %v614_v4  ;;  %v654_v7 = vadd.f32 %v653_v6, %v616_v0 }
 0x184   : > { %655 = vst [vmem:[%s1344_s5] sm:$0x1] %v654_v7 }
 0x185 PF: > { %s1357_s10 = smov %s1198_s18  ;;  %p17_p4 = scmp.ge.s32.totalorder %s1169_s28, 4  }
 0x186   : > { %s1358_s18 = smov %s1079_s19  ;;  %s1359_s19 = smov %s1083_s20 }
 0x187   : > { %s1360_s20 = smov %s1357_s10  ;;  %s1361_s21 = smov %s1169_s28 }
 0x188   :  { %19 = sbr.rel (!%p17_p4) target bundleno = 4 (0x4), region = 96 }
 0x18f   :  { %690 = vsyncpa [#allocation3], 1 }
 0x190   :  { %692 = vsyncpa [#allocation3 + $0x1], 1 }
 0x191   :  { %693 = vsyncpa [#allocation5], 1 }

</bundles_post_ra>
